<compile_context>
chip_gen: v7x
topology: tpu7x:2x2x1
jax: 0.10.0
libtpu: 0.0.40
codegen_flags: <defaults>
</compile_context>

<pallas_src>
import functools

import jax
import jax.numpy as jnp
from jax.experimental import pallas as pl
from jax.experimental.pallas import tpu as pltpu


def _round_up(x, m):
    return ((x + m - 1) // m) * m


def _render_kernel(n_pad, inv_n, s_ref, out_ref):
    # s_ref: (TR, 6*n_pad) slab, channel blocks of width n_pad:
    #   [deltas | density | z | f0 | f1 | f2]   (bf16 or f32)
    def chan(c):
        return s_ref[:, c * n_pad:(c + 1) * n_pad].astype(jnp.float32)

    deltas, density, ptsz = chan(0), chan(1), chan(2)
    f0, f1, f2 = chan(3), chan(4), chan(5)

    sig_delta = -density * deltas                            # (TR, N)

    # Strictly-lower-triangular cumsum matrix generated in-kernel:
    # tri[j, i] = 1 if j < i.  ~N^2/1024 VALU vreg ops; hides under the DMA.
    row = jax.lax.broadcasted_iota(jnp.int32, (n_pad, n_pad), 0)
    col = jax.lax.broadcasted_iota(jnp.int32, (n_pad, n_pad), 1)
    tri = (row < col).astype(jnp.float32)

    # Exclusive cumulative sum along samples on the MXU:
    #   csum[:, i] = sum_{j < i} sig_delta[:, j]
    csum_excl = jnp.dot(sig_delta, tri, preferred_element_type=jnp.float32)
    weights = jnp.exp(csum_excl) * (1.0 - jnp.exp(sig_delta))   # (TR, N)

    # Row reductions as ones-row matmuls (contract last dims of both operands,
    # the q @ k^T pattern): the MXU produces the result already lane-dense as
    # (1, TR), so the (4, TR) output block is written with full-lane stores.
    ones_row = jnp.ones((1, n_pad), jnp.float32)

    def rowsum(v):                                            # (TR, N) -> (1, TR)
        return jax.lax.dot_general(
            ones_row, v, (((1,), (1,)), ((), ())),
            preferred_element_type=jnp.float32)

    out_ref[...] = jnp.concatenate(
        [rowsum(weights * f0),
         rowsum(weights * f1),
         rowsum(weights * f2),
         rowsum(density * ptsz) * inv_n], axis=0)             # (4, TR)


def build_sample_slab(depth_values, density, feature, sample_points,
                      *, dtype=jnp.bfloat16):
    """Pack per-sample channels into the fused (R, 6*n_pad) slab the kernel
    consumes: [deltas | density | z | f0 | f1 | f2], each n_pad = roundup(N,128)
    wide.  deltas are computed here in f32 (bf16 subtraction of nearby depths
    would cancel) and only then narrowed.  In production, emit this slab
    directly upstream (sampler / implicit_fn) to avoid the extra repack pass.
    """
    depth_values = depth_values.astype(jnp.float32)
    if density.ndim == 3:
        density = density[..., 0]
    density = density.astype(jnp.float32)
    z = sample_points[..., 2].astype(jnp.float32)
    f = feature.astype(jnp.float32)

    R, N = depth_values.shape
    deltas = jnp.concatenate(
        [depth_values[:, 1:] - depth_values[:, :-1],
         jnp.full((R, 1), 1e10, jnp.float32)], axis=-1)

    n_pad = _round_up(N, 128)
    chans = [deltas, density, z, f[..., 0], f[..., 1], f[..., 2]]
    if n_pad != N:
        chans = [jnp.pad(c, ((0, 0), (0, n_pad - N))) for c in chans]
    slab = jnp.concatenate(chans, axis=-1)                    # (R, 6*n_pad)
    return slab.astype(dtype), N


@functools.partial(jax.jit, static_argnames=("n_samples", "tile_r"))
def volume_render_fused(samples, *, n_samples, tile_r=1024):
    """NeRF volume rendering forward (Pallas TPU) on the fused sample slab.

    samples: (R, 6*n_pad) slab from build_sample_slab (bf16 or f32).
    n_samples: original (unpadded) number of samples per ray (for the mean).
    Returns {"feature": (R, 3) f32, "depth": (R,) f32}.
    """
    R, W = samples.shape
    n_pad = W // 6
    if W != 6 * n_pad or n_pad % 128 != 0:
        raise ValueError("samples must be (R, 6*n_pad) with n_pad % 128 == 0")

    # Tile sizing: large tiles for DMA efficiency, but keep >= 2 grid steps
    # when possible (v7x megacore) and don't over-pad tiny ray counts.
    cap = max(256, _round_up(-(-R // 2), 256))
    tr = max(256, min(_round_up(tile_r, 256), cap))
    n_tiles = pl.cdiv(R, tr)
    R_pad = n_tiles * tr
    if R_pad != R:
        # Padded rays are all-zero -> zero weights -> zero outputs (sliced off).
        samples = jnp.pad(samples, ((0, R_pad - R), (0, 0)))

    kernel = functools.partial(_render_kernel, n_pad, 1.0 / float(n_samples))

    bytes_in = int(samples.size) * samples.dtype.itemsize
    cost = pl.CostEstimate(
        flops=2 * R_pad * n_pad * n_pad + 14 * R_pad * n_pad,
        transcendentals=2 * R_pad * n_pad,
        bytes_accessed=bytes_in + 4 * R_pad * 4)

    out = pl.pallas_call(
        kernel,
        out_shape=jax.ShapeDtypeStruct((4, R_pad), jnp.float32),
        grid_spec=pltpu.PrefetchScalarGridSpec(
            num_scalar_prefetch=0,
            grid=(n_tiles,),                                   # ray tiles
            in_specs=[pl.BlockSpec((tr, 6 * n_pad), lambda i: (i, 0))],
            out_specs=pl.BlockSpec((4, tr), lambda i: (0, i)),  # lane-dense
        ),
        compiler_params=pltpu.CompilerParams(
            dimension_semantics=("parallel",),                 # v7x 2-TC shard
            vmem_limit_bytes=48 * 1024 * 1024),                # fits v5e/v6e/v7x
        cost_estimate=cost,
    )(samples)

    return {"feature": out[:3, :R].T, "depth": out[3, :R]}


def volume_render(depth_values, density, feature, sample_points,
                  *, tile_r=1024, slab_dtype=jnp.bfloat16):
    """Convenience adapter from the original packed layout:
       depth_values (R, N), density (R, N[,1]), feature (R, N, 3),
       sample_points (R, N, 3).
    The repack is an extra HBM pass on a memory-bound op; production callers
    should build the fused slab upstream and call volume_render_fused."""
    slab, n = build_sample_slab(depth_values, density, feature, sample_points,
                                dtype=slab_dtype)
    return volume_render_fused(slab, n_samples=n, tile_r=tile_r)


def _reference_from_slab(slab, n_samples):
    """Pure-JAX replica of the PyTorch forward, computed from the (possibly
    quantized) slab the kernel sees."""
    s = slab.astype(jnp.float32)
    n_pad = s.shape[1] // 6
    deltas = s[:, :n_pad]
    density = s[:, n_pad:2 * n_pad]
    z = s[:, 2 * n_pad:3 * n_pad]
    feat = jnp.stack([s[:, (3 + c) * n_pad:(4 + c) * n_pad] for c in range(3)],
                     axis=-1)                                  # (R, n_pad, 3)
    sig_delta = -density * deltas
    shifted = jnp.concatenate([jnp.zeros_like(sig_delta[:, :1]),
                               sig_delta[:, :-1]], axis=1)
    weights = jnp.exp(jnp.cumsum(shifted, axis=1)) * (1.0 - jnp.exp(sig_delta))
    feature = jnp.sum(weights[..., None] * feat, axis=1)       # (R, 3)
    depth = jnp.sum(density * z, axis=1) / n_samples           # (R,)
    return feature, depth


if __name__ == "__main__":
    key = jax.random.PRNGKey(0)
    k1, k2, k3, k4 = jax.random.split(key, 4)

    # Small shapes: R not a multiple of the tile (exercises ray padding),
    # N not a multiple of 128 (exercises sample padding).
    R, N = 400, 64
    steps = jax.random.uniform(k1, (R, N), minval=0.02, maxval=0.1,
                               dtype=jnp.float32)
    depth_values = jnp.cumsum(steps, axis=1) + 1.0             # increasing depths
    density = jax.random.uniform(k2, (R, N, 1), minval=0.0, maxval=2.0,
                                 dtype=jnp.float32)
    feature = jax.random.uniform(k3, (R, N, 3), dtype=jnp.float32)
    sample_points = jax.random.normal(k4, (R, N, 3), dtype=jnp.float32)

    # --- f32 slab path: exact parity with the PyTorch formula ---------------
    slab32, n = build_sample_slab(depth_values, density, feature, sample_points,
                                  dtype=jnp.float32)
    out32 = volume_render_fused(slab32, n_samples=n, tile_r=1024)
    jax.block_until_ready(out32)
    ref_feat, ref_depth = _reference_from_slab(slab32, n)
    assert out32["feature"].shape == (R, 3) and out32["depth"].shape == (R,)
    assert jnp.allclose(out32["feature"], ref_feat, rtol=1e-4, atol=1e-5)
    assert jnp.allclose(out32["depth"], ref_depth, rtol=1e-4, atol=1e-5)

    # --- bf16 slab path (default, low-HBM production path) ------------------
    out16 = volume_render(depth_values, density, feature, sample_points,
                          slab_dtype=jnp.bfloat16)
    jax.block_until_ready(out16)
    slab16, _ = build_sample_slab(depth_values, density, feature, sample_points,
                                  dtype=jnp.bfloat16)
    qref_feat, qref_depth = _reference_from_slab(slab16, n)
    assert jnp.allclose(out16["feature"], qref_feat, rtol=1e-3, atol=1e-4)
    assert jnp.allclose(out16["depth"], qref_depth, rtol=1e-3, atol=1e-4)

    print("KERNEL_OK")
</pallas_src>

<mosaic_0001>
module attributes {stable_mosaic.version = 11 : i64} {
  func.func @_render_kernel(%arg0: i32, %arg1: memref<256x768xf32, #tpu.memory_space<vmem>>, %arg2: memref<4x256xf32, #tpu.memory_space<vmem>>) attributes {dimension_semantics = [#tpu.dimension_semantics<parallel>], iteration_bounds = array<i64: 2>, scalar_prefetch = 0 : i64, scratch_operands = 0 : i64, tpu.core_type = #tpu.core_type<tc>, window_params = [{transform_indices = @transform_0, window_bounds = array<i64: 256, 768>}, {transform_indices = @transform_1, window_bounds = array<i64: 4, 256>}]} {
    %c0 = arith.constant 0 : index
    %c0_0 = arith.constant 0 : index
    %0 = vector.load %arg1[%c0, %c0_0] : memref<256x768xf32, #tpu.memory_space<vmem>>, vector<256x128xf32>
    %c0_1 = arith.constant 0 : index
    %c128 = arith.constant 128 : index
    %1 = vector.load %arg1[%c0_1, %c128] : memref<256x768xf32, #tpu.memory_space<vmem>>, vector<256x128xf32>
    %c0_2 = arith.constant 0 : index
    %c256 = arith.constant 256 : index
    %2 = vector.load %arg1[%c0_2, %c256] : memref<256x768xf32, #tpu.memory_space<vmem>>, vector<256x128xf32>
    %c0_3 = arith.constant 0 : index
    %c384 = arith.constant 384 : index
    %3 = vector.load %arg1[%c0_3, %c384] : memref<256x768xf32, #tpu.memory_space<vmem>>, vector<256x128xf32>
    %c0_4 = arith.constant 0 : index
    %c512 = arith.constant 512 : index
    %4 = vector.load %arg1[%c0_4, %c512] : memref<256x768xf32, #tpu.memory_space<vmem>>, vector<256x128xf32>
    %c0_5 = arith.constant 0 : index
    %c640 = arith.constant 640 : index
    %5 = vector.load %arg1[%c0_5, %c640] : memref<256x768xf32, #tpu.memory_space<vmem>>, vector<256x128xf32>
    %cst = arith.constant 0.000000e+00 : f32
    %6 = vector.broadcast %cst : f32 to vector<256x128xf32>
    %7 = arith.subf %6, %1 : vector<256x128xf32>
    %8 = arith.mulf %7, %0 : vector<256x128xf32>
    %9 = tpu.iota {dimensions = array<i32: 0>} : vector<128x128xi32>
    %10 = tpu.iota {dimensions = array<i32: 1>} : vector<128x128xi32>
    %11 = arith.cmpi slt, %9, %10 : vector<128x128xi32>
    %12 = arith.extui %11 : vector<128x128xi1> to vector<128x128xi32>
    %13 = arith.sitofp %12 : vector<128x128xi32> to vector<128x128xf32>
    %cst_6 = arith.constant dense<0.000000e+00> : vector<256x128xf32>
    %14 = tpu.matmul %8, %13, %cst_6 {dimension_numbers = #tpu.dot_dimension_numbers<[1], [0], [0], [1], [0, 0, 1, 1], [], []>} : vector<256x128xf32>, vector<128x128xf32>, vector<256x128xf32> -> vector<256x128xf32>
    %15 = math.exp %14 : vector<256x128xf32>
    %16 = math.exp %8 : vector<256x128xf32>
    %cst_7 = arith.constant 1.000000e+00 : f32
    %17 = vector.broadcast %cst_7 : f32 to vector<256x128xf32>
    %18 = arith.subf %17, %16 : vector<256x128xf32>
    %19 = arith.mulf %15, %18 : vector<256x128xf32>
    %cst_8 = arith.constant 1.000000e+00 : f32
    %20 = vector.broadcast %cst_8 : f32 to vector<1x128xf32>
    %21 = arith.mulf %19, %3 : vector<256x128xf32>
    %cst_9 = arith.constant dense<0.000000e+00> : vector<1x256xf32>
    %22 = tpu.matmul %20, %21, %cst_9 {dimension_numbers = #tpu.dot_dimension_numbers<[1], [1], [0], [0], [0, 0, 1, 0], [], []>} : vector<1x128xf32>, vector<256x128xf32>, vector<1x256xf32> -> vector<1x256xf32>
    %23 = arith.mulf %19, %4 : vector<256x128xf32>
    %cst_10 = arith.constant dense<0.000000e+00> : vector<1x256xf32>
    %24 = tpu.matmul %20, %23, %cst_10 {dimension_numbers = #tpu.dot_dimension_numbers<[1], [1], [0], [0], [0, 0, 1, 0], [], []>} : vector<1x128xf32>, vector<256x128xf32>, vector<1x256xf32> -> vector<1x256xf32>
    %25 = arith.mulf %19, %5 : vector<256x128xf32>
    %cst_11 = arith.constant dense<0.000000e+00> : vector<1x256xf32>
    %26 = tpu.matmul %20, %25, %cst_11 {dimension_numbers = #tpu.dot_dimension_numbers<[1], [1], [0], [0], [0, 0, 1, 0], [], []>} : vector<1x128xf32>, vector<256x128xf32>, vector<1x256xf32> -> vector<1x256xf32>
    %27 = arith.mulf %1, %2 : vector<256x128xf32>
    %cst_12 = arith.constant dense<0.000000e+00> : vector<1x256xf32>
    %28 = tpu.matmul %20, %27, %cst_12 {dimension_numbers = #tpu.dot_dimension_numbers<[1], [1], [0], [0], [0, 0, 1, 0], [], []>} : vector<1x128xf32>, vector<256x128xf32>, vector<1x256xf32> -> vector<1x256xf32>
    %cst_13 = arith.constant 1.562500e-02 : f32
    %29 = vector.broadcast %cst_13 : f32 to vector<1x256xf32>
    %30 = arith.mulf %28, %29 : vector<1x256xf32>
    %31 = tpu.concatenate %22, %24, %26, %30 in 0 : vector<1x256xf32>, vector<1x256xf32>, vector<1x256xf32>, vector<1x256xf32> -> vector<4x256xf32>
    %c0_14 = arith.constant 0 : index
    %c0_15 = arith.constant 0 : index
    %32 = vector.load %arg2[%c0_14, %c0_15] : memref<4x256xf32, #tpu.memory_space<vmem>>, vector<4x256xf32>
    tpu.vector_store %arg2[%c0_14, %c0_15], %31 {strides = array<i32>} : memref<4x256xf32, #tpu.memory_space<vmem>>, vector<4x256xf32>,
    return
  }
  func.func @transform_0(%arg0: i32) -> (i32, i32) {
    %c0_i32 = arith.constant 0 : i32
    %c0_i32_0 = arith.constant 0 : i32
    return %arg0, %c0_i32 : i32, i32
  }
  func.func @transform_1(%arg0: i32) -> (i32, i32) {
    %c0_i32 = arith.constant 0 : i32
    %c0_i32_0 = arith.constant 0 : i32
    return %c0_i32, %arg0 : i32, i32
  }
}

</mosaic_0001>

<bundles_post_ra>
// kernel: volume_render_fused.1
= control target key start
LH: loop header
LB: loop body
LE: loop exit
PB: predicated region body
PF: predicated region fallthrough
CT: control target
= control target key end

     0   :  { %s2007_s6 = smov 0   ;;  %s3011_s0 = inlined_call_operand.vmem [shape: f32[512,768], index: 0, kind: input, shape index: {}]   ;;  %s3012_s1 = inlined_call_operand.vmem [shape: f32[4,512], index: 1, kind: output, shape index: {}]  }
   0x1 LB: > { %s1365_s7 = sadd.s32 4294967295, %s1993_s6   ;;  %p1369_p0 = scmp.ge.s32.totalorder %s1993_s6, 1  ;;  %s1993_s6 = sphi %s2007_s6, %s11_s6  }
   0x2   : > { %p89_p1 = scmp.lt.s32.totalorder %s1993_s6, 3 }
   0x4   : > { %p90_p2 = pnand %p1369_p0, %p89_p1 }
   0x6   : > { %93 = sbr.rel (%p90_p2) target bundleno = 670 (0x29e), region = 24 }
   0xd   : > { %v379_v0 = vlaneseq  ;;  %s1370_s8 = sshll.u32 %s1365_s7, 5  ;;  %v1995_v8 = vmov 1.0|1.0   ;;  %s1372_s13 = sshll.u32 %s1365_s7, 1 }
   0xe   : > { %p111_p3 = scmp.lt.s32.totalorder %s1370_s8, 63  ;;  %p118_p4 = scmp.lt.s32.totalorder %s1372_s13, 3 }
   0xf   : > { %v380_v1 = vshrl.u32 %v379_v0, 7  ;;  %v2017_v2 = vand.u32 127, %v379_v0 }
  0x10   : > { %s3193_s8 = smov (!%p111_p3, %s1370_s8), 63  ;;  %s3195_s13 = smov (!%p118_p4, %s1372_s13), 3 }
  0x11   : > { %v381_v3 = vadd.s32 8, %v380_v1  ;;  %vm398_vm0 = vcmp.lt.s32.totalorder %v380_v1, %v2017_v2  ;;  %v382_v4 = vadd.s32 16, %v380_v1  ;;  %v383_v5 = vadd.s32 24, %v380_v1  ;;  %s1832_s9 = smul.u32 48, %s3193_s8  ;;  %s1373_s14 = sshll.u32 %s3195_s13, 2 }
  0x12   : > { %v384_v6 = vadd.s32 32, %v380_v1  ;;  %v385_v7 = vadd.s32 40, %v380_v1  ;;  %v386_v10 = vadd.s32 48, %v380_v1  ;;  %v387_v11 = vadd.s32 56, %v380_v1  ;;  %s121_s17 = scalar_lea.vmem %s3012_s1, %s1373_s14 }
  0x13   : > { %vm399_vm1 = vcmp.lt.s32.totalorder %v381_v3, %v2017_v2  ;;  %vm400_vm2 = vcmp.lt.s32.totalorder %v382_v4, %v2017_v2  ;;  %vm401_vm3 = vcmp.lt.s32.totalorder %v383_v5, %v2017_v2  ;;  %s2026_s12 = scalar_lea.vmem %s3011_s0, %s1832_s9  ;;  %v388_v15 = vadd.s32 64, %v380_v1 }
  0x14   : > { %vm1672_vm4 = vmpackc.low %vm399_vm1, %vm398_vm0  ;;  %vm402_vm6 = vcmp.lt.s32.totalorder %v384_v6, %v2017_v2  ;;  %vm403_vm7 = vcmp.lt.s32.totalorder %v385_v7, %v2017_v2  ;;  %v2035_v12 = vld [vmem:[%s2026_s12 + $0x8] sm:$0xff]  ;;  %v123_v13 = vld [vmem:[%s2026_s12] sm:$0xff]  ;;  %vm404_vm9 = vcmp.lt.s32.totalorder %v386_v10, %v2017_v2  ;;  %vm405_vm10 = vcmp.lt.s32.totalorder %v387_v11, %v2017_v2 }
  0x15   : > { %1673 = vmatprep.subr.msk.bf16.mxu0 %vm1672_vm4, %v1995_v8  ;;  %vm2028_vm5 = vmpackc.low %vm401_vm3, %vm400_vm2  ;;  %v315_v14 = vsub.f32 0.0, %v2035_v12  ;;  %v389_v16 = vadd.s32 72, %v380_v1  ;;  %vm406_vm12 = vcmp.lt.s32.totalorder %v388_v15, %v2017_v2  ;;  %v390_v18 = vadd.s32 80, %v380_v1  ;;  %v2057_v24 = vld [vmem:[%s2026_s12 + $0x38] sm:$0xff]  ;;  %v2060_v25 = vld [vmem:[%s2026_s12 + $0x68] sm:$0xff] }
  0x16   : > { %1675 = vmatpush3.bf16.msk.msra.mxu0 %vm1672_vm4, %v1995_v8  ;;  %vm1680_vm8 = vmpackc.low %vm403_vm7, %vm402_vm6  ;;  %v391_v19 = vadd.s32 88, %v380_v1  ;;  %v392_v20 = vadd.s32 96, %v380_v1  ;;  %v393_v21 = vadd.s32 104, %v380_v1  ;;  %v394_v22 = vadd.s32 112, %v380_v1  ;;  %v124_v27 = vld [vmem:[%s2026_s12 + $0x30] sm:$0xff]  ;;  %v2066_v29 = vld [vmem:[%s2026_s12 + $0x98] sm:$0xff] }
  0x17   : > { %1677 = vmatprep.subr.msk.bf16.mxu0 %vm2028_vm5, %v1995_v8  ;;  %v2043_v17 = vmul.f32 %v315_v14, %v123_v13  ;;  %vm1684_vm11 = vmpackc.low %vm405_vm10, %vm404_vm9  ;;  %vm407_vm13 = vcmp.lt.s32.totalorder %v389_v16, %v2017_v2  ;;  %vm408_vm15 = vcmp.lt.s32.totalorder %v390_v18, %v2017_v2  ;;  %v395_v23 = vadd.s32 120, %v380_v1  ;;  %v125_v30 = vld [vmem:[%s2026_s12 + $0x60] sm:$0xff]  ;;  %v2070_v31 = vld [vmem:[%s2026_s12 + $0xc8] sm:$0xff] }
  0x18   : > { %vm1688_vm14 = vmpackc.low %vm407_vm13, %vm406_vm12  ;;  %vm409_vm0 = vcmp.lt.s32.totalorder %v391_v19, %v2017_v2  ;;  %vm410_vm2 = vcmp.lt.s32.totalorder %v392_v20, %v2017_v2  ;;  %vm411_vm3 = vcmp.lt.s32.totalorder %v393_v21, %v2017_v2  ;;  %v316_v26 = vsub.f32 0.0, %v2057_v24  ;;  %v126_v35 = vld [vmem:[%s2026_s12 + $0x90] sm:$0xff]  ;;  %v2080_v37 = vld [vmem:[%s2026_s12 + $0xf8] sm:$0xff] }
  0x19   : > { %1624 = vmatprep.mubr.f32.mxu0 %v2043_v17  ;;  %vm1692_vm1 = vmpackc.low %vm409_vm0, %vm408_vm15  ;;  %vm413_vm6 = vcmp.lt.s32.totalorder %v395_v23, %v2017_v2  ;;  %v317_v28 = vsub.f32 0.0, %v2060_v25  ;;  %v318_v33 = vsub.f32 0.0, %v2066_v29  ;;  %v319_v36 = vsub.f32 0.0, %v2070_v31  ;;  %v127_v38 = vld [vmem:[%s2026_s12 + $0xc0] sm:$0xff]  ;;  %v2084_v39 = vld [vmem:[%s2026_s12 + $0x128] sm:$0xff] }
  0x1a   : > { %1679 = vmatpush3.bf16.msk.msra.mxu0 %vm2028_vm5, %v1995_v8  ;;  %vm1696_vm4 = vmpackc.low %vm411_vm3, %vm410_vm2  ;;  %vm412_vm5 = vcmp.lt.s32.totalorder %v394_v22, %v2017_v2  ;;  %v2072_v32 = vmul.f32 %v316_v26, %v124_v27  ;;  %v320_v41 = vsub.f32 0.0, %v2080_v37  ;;  %v128_v43 = vld [vmem:[%s2026_s12 + $0xf0] sm:$0xff]  ;;  %v321_v44 = vsub.f32 0.0, %v2084_v39  ;;  %v2096_v45 = vld [vmem:[%s2026_s12 + $0x158] sm:$0xff] }
  0x1b   : > { %1681 = vmatprep.subr.msk.bf16.mxu0 %vm1680_vm8, %v1995_v8  ;;  %vm1700_vm7 = vmpackc.low %vm413_vm6, %vm412_vm5  ;;  %v2075_v34 = vmul.f32 %v317_v28, %v125_v30  ;;  %v2087_v40 = vmul.f32 %v318_v33, %v126_v35  ;;  %v2091_v42 = vmul.f32 %v319_v36, %v127_v38  ;;  %v129_v46 = vld [vmem:[%s2026_s12 + $0x120] sm:$0xff]  ;;  %v2100_v47 = vld [vmem:[%s2026_s12 + $0x188] sm:$0xff]  ;;  %v322_v49 = vsub.f32 0.0, %v2096_v45 }
  0x1c   : > { %v2103_v48 = vmul.f32 %v320_v41, %v128_v43  ;;  %v2107_v50 = vmul.f32 %v321_v44, %v129_v46  ;;  %v130_v51 = vld [vmem:[%s2026_s12 + $0x150] sm:$0xff]  ;;  %v323_v52 = vsub.f32 0.0, %v2100_v47  ;;  %v2112_v53 = vld [vmem:[%s2026_s12 + $0x1b8] sm:$0xff]  ;;  %v131_v54 = vld [vmem:[%s2026_s12 + $0x180] sm:$0xff]  ;;  %vm1298_vm9 = vcmask 1041408  }
  0x1d   : > { %v2116_v55 = vld [vmem:[%s2026_s12 + $0x1e8] sm:$0xff]  ;;  %v2119_v56 = vmul.f32 %v322_v49, %v130_v51  ;;  %v324_v57 = vsub.f32 0.0, %v2112_v53  ;;  %v132_v59 = vld [vmem:[%s2026_s12 + $0x1b0] sm:$0xff]  ;;  %v2128_v61 = vld [vmem:[%s2026_s12 + $0x218] sm:$0xff]  ;;  %vm1301_vm10 = vcmask 1042432  }
  0x1e   : > { %1683 = vmatpush3.bf16.msk.msra.mxu0 %vm1680_vm8, %v1995_v8  ;;  %v2123_v58 = vmul.f32 %v323_v52, %v131_v54  ;;  %v325_v60 = vsub.f32 0.0, %v2116_v55  ;;  %v133_v62 = vld [vmem:[%s2026_s12 + $0x1e0] sm:$0xff]  ;;  %v2132_v63 = vld [vmem:[%s2026_s12 + $0x248] sm:$0xff]  ;;  %v326_v1 = vsub.f32 0.0, %v2128_v61  ;;  %v134_v3 = vld [vmem:[%s2026_s12 + $0x210] sm:$0xff]  ;;  %vm1295_vm8 = vcmask 1040384  }
  0x1f   : > { %1685 = vmatprep.subr.msk.bf16.mxu0 %vm1684_vm11, %v1995_v8  ;;  %v2135_v0 = vmul.f32 %v324_v57, %v132_v59  ;;  %v327_v4 = vsub.f32 0.0, %v2132_v63  ;;  %v2144_v5 = vld [vmem:[%s2026_s12 + $0x278] sm:$0xff]  ;;  %v135_v6 = vld [vmem:[%s2026_s12 + $0x240] sm:$0xff]  ;;  %v2148_v7 = vld [vmem:[%s2026_s12 + $0x2a8] sm:$0xff] }
  0x20   : > { %v2139_v2 = vmul.f32 %v325_v60, %v133_v62  ;;  %v328_v9 = vsub.f32 0.0, %v2144_v5  ;;  %v136_v11 = vld [vmem:[%s2026_s12 + $0x270] sm:$0xff]  ;;  %v329_v13 = vsub.f32 0.0, %v2148_v7  ;;  %v2160_v14 = vld [vmem:[%s2026_s12 + $0x2d8] sm:$0xff]  ;;  %v137_v15 = vld [vmem:[%s2026_s12 + $0x2a0] sm:$0xff] }
  0x21   : > { %v2155_v10 = vmul.f32 %v327_v4, %v135_v6  ;;  %v171_v16 = vld [vmem:[%s2026_s12 + $0x308] sm:$0xff]  ;;  %v330_v19 = vsub.f32 0.0, %v2160_v14  ;;  %v138_v21 = vld [vmem:[%s2026_s12 + $0x2d0] sm:$0xff]  ;;  %v172_v23 = vld [vmem:[%s2026_s12 + $0x338] sm:$0xff] }
  0x22   : > { %1687 = vmatpush3.bf16.msk.msra.mxu0 %vm1684_vm11, %v1995_v8  ;;  %v2165_v18 = vmul.f32 %v328_v9, %v136_v11  ;;  %v2169_v20 = vmul.f32 %v329_v13, %v137_v15  ;;  %v331_v22 = vsub.f32 0.0, %v171_v16  ;;  %v139_v26 = vld [vmem:[%s2026_s12 + $0x300] sm:$0xff]  ;;  %v173_v27 = vld [vmem:[%s2026_s12 + $0x368] sm:$0xff]  ;;  %v332_v30 = vsub.f32 0.0, %v172_v23  ;;  %v140_v35 = vld [vmem:[%s2026_s12 + $0x330] sm:$0xff] }
  0x23   : > { %1689 = vmatprep.subr.msk.bf16.mxu0 %vm1688_vm14, %v1995_v8  ;;  %v2176_v28 = vmul.f32 %v330_v19, %v138_v21  ;;  %v333_v36 = vsub.f32 0.0, %v173_v27  ;;  %v174_v38 = vld [vmem:[%s2026_s12 + $0x398] sm:$0xff]  ;;  %v141_v41 = vld [vmem:[%s2026_s12 + $0x360] sm:$0xff]  ;;  %v175_v43 = vld [vmem:[%s2026_s12 + $0x3c8] sm:$0xff] }
  0x24   : > { %v2179_v33 = vmul.f32 %v331_v22, %v139_v26  ;;  %v2186_v44 = vmul.f32 %v332_v30, %v140_v35  ;;  %v334_v46 = vsub.f32 0.0, %v174_v38  ;;  %v142_v51 = vld [vmem:[%s2026_s12 + $0x390] sm:$0xff]  ;;  %v335_v52 = vsub.f32 0.0, %v175_v43  ;;  %v176_v54 = vld [vmem:[%s2026_s12 + $0x3f8] sm:$0xff]  ;;  %v143_v57 = vld [vmem:[%s2026_s12 + $0x3c0] sm:$0xff] }
  0x25   : > { %v2189_v49 = vmul.f32 %v333_v36, %v141_v41  ;;  %v177_v59 = vld [vmem:[%s2026_s12 + $0x428] sm:$0xff]  ;;  %v336_v62 = vsub.f32 0.0, %v176_v54  ;;  %v178_v6 = vld [vmem:[%s2026_s12 + $0x458] sm:$0xff]  ;;  %v145_v9 = vld [vmem:[%s2026_s12 + $0x420] sm:$0xff] }
  0x26   : > { %1691 = vmatpush3.bf16.msk.msra.mxu0 %vm1688_vm14, %v1995_v8  ;;  %v2196_v60 = vmul.f32 %v334_v46, %v142_v51  ;;  %v337_v4 = vsub.f32 0.0, %v177_v59  ;;  %v179_v11 = vld [vmem:[%s2026_s12 + $0x488] sm:$0xff]  ;;  %v338_v15 = vsub.f32 0.0, %v178_v6  ;;  %v146_v19 = vld [vmem:[%s2026_s12 + $0x450] sm:$0xff]  ;;  %v180_v22 = vld [vmem:[%s2026_s12 + $0x4b8] sm:$0xff] }
  0x27   : > { %1693 = vmatprep.subr.msk.bf16.mxu0 %vm1692_vm1, %v1995_v8  ;;  %v339_v21 = vsub.f32 0.0, %v179_v11  ;;  %v147_v23 = vld [vmem:[%s2026_s12 + $0x480] sm:$0xff]  ;;  %v181_v26 = vld [vmem:[%s2026_s12 + $0x4e8] sm:$0xff]  ;;  %v340_v30 = vsub.f32 0.0, %v180_v22  ;;  %v148_v36 = vld [vmem:[%s2026_s12 + $0x4b0] sm:$0xff] }
  0x28   : > { %v2209_v16 = vmul.f32 %v337_v4, %v145_v9  ;;  %v2216_v27 = vmul.f32 %v338_v15, %v146_v19  ;;  %v341_v38 = vsub.f32 0.0, %v181_v26  ;;  %v182_v41 = vld [vmem:[%s2026_s12 + $0x518] sm:$0xff]  ;;  %v149_v43 = vld [vmem:[%s2026_s12 + $0x4e0] sm:$0xff]  ;;  %v183_v46 = vld [vmem:[%s2026_s12 + $0x548] sm:$0xff] }
  0x29   : > { %v2219_v35 = vmul.f32 %v339_v21, %v147_v23  ;;  %v2226_v51 = vmul.f32 %v340_v30, %v148_v36  ;;  %v343_v59 = vsub.f32 0.0, %v183_v46  ;;  %v185_v4 = vld [vmem:[%s2026_s12 + $0x5a8] sm:$0xff]  ;;  %v152_v15 = vld [vmem:[%s2026_s12 + $0x570] sm:$0xff]  ;;  %v186_v21 = vld [vmem:[%s2026_s12 + $0x5d8] sm:$0xff]  ;;  %v739_v46 = vmul.f32 1.442695, %v2075_v34 }
  0x2a   : > { %1695 = vmatpush3.bf16.msk.msra.mxu0 %vm1692_vm1, %v1995_v8  ;;  %v2229_v54 = vmul.f32 %v341_v38, %v149_v43  ;;  %v345_v19 = vsub.f32 0.0, %v185_v4  ;;  %v153_v22 = vld [vmem:[%s2026_s12 + $0x5a0] sm:$0xff]  ;;  %v346_v26 = vsub.f32 0.0, %v186_v21  ;;  %v154_v36 = vld [vmem:[%s2026_s12 + $0x5d0] sm:$0xff]  ;;  %v737_v43 = vmul.f32 1.442695, %v2072_v32 }
  0x2b   : > { %1697 = vmatprep.subr.msk.bf16.mxu0 %vm1696_vm4, %v1995_v8  ;;  %v188_v4 = vld [vmem:[%s2026_s12 + $0x40] sm:$0xff] }
  0x2c   : > { %v2248_v30 = vmul.f32 %v345_v19, %v153_v22  ;;  %v2252_v38 = vmul.f32 %v346_v26, %v154_v36  ;;  %v189_v19 = vld [vmem:[%s2026_s12 + $0x70] sm:$0xff] }
  0x2d   : > { %v2302_v36 = vmul.f32 %v189_v19, %v2060_v25 }
  0x2e   : > { %1699 = vmatpush3.bf16.msk.msra.mxu0 %vm1696_vm4, %v1995_v8 }
  0x2f   : > { %1701 = vmatprep.subr.msk.bf16.mxu0 %vm1700_vm7, %v1995_v8  ;;  %3058 = vst [vmem:[#allocation4_spill] sm:$0xff] %v2302_v36  ;;  %v223_v36 = vld [vmem:[%s2026_s12 + $0xd8] sm:$0xff] }
  0x32   : > { %1703 = vmatpush3.bf16.msk.msra.mxu0 %vm1700_vm7, %v1995_v8  ;;  %v2151_v8 = vmul.f32 %v326_v1, %v134_v3  ;;  %v2199_v1 = vmul.f32 %v335_v52, %v143_v57  ;;  %v144_v3 = vld [vmem:[%s2026_s12 + $0x3f0] sm:$0xff]  ;;  %v342_v52 = vsub.f32 0.0, %v182_v41  ;;  %v735_v41 = vmul.f32 1.442695, %v2043_v17 }
  0x33   : > { %v2206_v13 = vmul.f32 %v336_v62, %v144_v3  ;;  %v150_v57 = vld [vmem:[%s2026_s12 + $0x510] sm:$0xff]  ;;  %v184_v62 = vld [vmem:[%s2026_s12 + $0x578] sm:$0xff]  ;;  %v151_v3 = vld [vmem:[%s2026_s12 + $0x540] sm:$0xff]  ;;  %v749_v17 = vmul.f32 1.442695, %v2119_v56 }
  0x34   : > { %v2236_v6 = vmul.f32 %v342_v52, %v150_v57  ;;  %v344_v9 = vsub.f32 0.0, %v184_v62  ;;  %v2239_v11 = vmul.f32 %v343_v59, %v151_v3  ;;  %v741_v52 = vmul.f32 1.442695, %v2087_v40  ;;  %v187_v3 = vld [vmem:[%s2026_s12 + $0x10] sm:$0xff] }
  0x35   : > { %1625 = vmatmul.mubr.f32.vlgmr.msra.gmra.mrb[0].mxu0 %v2072_v32  ;;  %1843 = vpow2.f32 %v735_v41  ;;  %v743_v57 = vmul.f32 1.442695, %v2091_v42  ;;  %v745_v59 = vmul.f32 1.442695, %v2103_v48  ;;  %v747_v62 = vmul.f32 1.442695, %v2107_v50 }
  0x36   : > { %1627 = vmatprep.mubr.f32.mxu0 %v2075_v34  ;;  %v2245_v23 = vmul.f32 %v344_v9, %v152_v15  ;;  %1845 = vpow2.f32 %v737_v43  ;;  %v751_v32 = vmul.f32 1.442695, %v2123_v58  ;;  %v753_v34 = vmul.f32 1.442695, %v2135_v0 }
  0x37   : > { %1847 = vpow2.f32 %v739_v46  ;;  %v773_v41 = vmul.f32 1.442695, %v2196_v60  ;;  %v191_v46 = vld [vmem:[%s2026_s12 + $0xd0] sm:$0xff]  ;;  %v777_v25 = vmul.f32 1.442695, %v2206_v13 }
  0x38   : > { %1849 = vpow2.f32 %v741_v52  ;;  %v192_v52 = vld [vmem:[%s2026_s12 + $0x100] sm:$0xff] }
  0x39   : > { %1628 = vmatmul.mubr.f32.gmra.mrb[2].mxu0 %v2087_v40  ;;  %1851 = vpow2.f32 %v743_v57  ;;  %v3013_v40 = vmov 1.0   ;;  %v193_v57 = vld [vmem:[%s2026_s12 + $0x130] sm:$0xff] }
  0x3a   : > { %1630 = vmatprep.mubr.f32.mxu0 %v2091_v42  ;;  %1853 = vpow2.f32 %v745_v59  ;;  %1488 = vmatprep.mubr.f32.mxu1 %v3013_v40  ;;  %v2271_v42 = vmul.f32 %v187_v3, %v2035_v12  ;;  %v763_v12 = vmul.f32 1.442695, %v2169_v20  ;;  %v194_v59 = vld [vmem:[%s2026_s12 + $0x160] sm:$0xff]  ;;  %v779_v3 = vmul.f32 1.442695, %v2209_v16 }
  0x3b   : > { %1855 = vpow2.f32 %v747_v62  ;;  %v195_v62 = vld [vmem:[%s2026_s12 + $0x190] sm:$0xff] }
  0x3c   : > { %3056 = vst [vmem:[#allocation2_spill] sm:$0xff] %v2271_v42  ;;  %1857 = vpow2.f32 %v749_v17  ;;  %v781_v17 = vmul.f32 1.442695, %v2216_v27  ;;  %v255_v42 = vld [vmem:[%s2026_s12 + $0xe0] sm:$0xff] }
  0x3d   : > { %1631 = vmatmul.mubr.f32.gmra.mrb[4].mxu0 %v2103_v48  ;;  %v2274_v48 = vmul.f32 %v188_v4, %v2057_v24  ;;  %1859 = vpow2.f32 %v751_v32  ;;  %v220_v24 = vld [vmem:[%s2026_s12 + $0x48] sm:$0xff] }
  0x3e   : > { %1633 = vmatprep.mubr.f32.mxu0 %v2107_v50  ;;  %v755_v50 = vmul.f32 1.442695, %v2139_v2  ;;  %1861 = vpow2.f32 %v753_v34  ;;  %v2332_v34 = vmul.f32 %v191_v46, %v2070_v31  ;;  %v199_v31 = vld [vmem:[%s2026_s12 + $0x250] sm:$0xff] }
  0x3f   : > { %3057 = vst [vmem:[#allocation3_spill] sm:$0xff] %v2274_v48  ;;  %v2280_v9 = vpop.eup %1843 }
  0x40   : > { %1863 = vpow2.f32 %v755_v50  ;;  %v2285_v15 = vpop.eup %1845  ;;  %3060 = vst [vmem:[#allocation6_spill] sm:$0xff] %v2332_v34  ;;  %v2335_v50 = vmul.f32 %v192_v52, %v2080_v37  ;;  %v283_v52 = vld [vmem:[%s2026_s12 + $0x28] sm:$0xff] }
  0x41   : > { %1634 = vmatmul.mubr.f32.gmra.mrb[6].mxu0 %v2119_v56  ;;  %v757_v56 = vmul.f32 1.442695, %v2151_v8 }
  0x42   : > { %1636 = vmatprep.mubr.f32.mxu0 %v2123_v58  ;;  %v759_v58 = vmul.f32 1.442695, %v2155_v10  ;;  %3061 = vst [vmem:[#allocation7_spill] sm:$0xff] %v2335_v50 }
  0x43   : > { %1865 = vpow2.f32 %v757_v56  ;;  %v198_v56 = vld [vmem:[%s2026_s12 + $0x220] sm:$0xff] }
  0x44   : > { %1867 = vpow2.f32 %v759_v58 }
  0x45   : > { %1637 = vmatmul.mubr.f32.gmra.mrb[8].mxu0 %v2135_v0  ;;  %v761_v0 = vmul.f32 1.442695, %v2165_v18 }
  0x46   : > { %1639 = vmatprep.mubr.f32.mxu0 %v2139_v2  ;;  %v765_v2 = vmul.f32 1.442695, %v2176_v28 }
  0x47   : > { %1869 = vpow2.f32 %v761_v0  ;;  %v2347_v0 = vmul.f32 %v195_v62, %v2100_v47  ;;  %v2363_v47 = vmul.f32 %v198_v56, %v2128_v61  ;;  %v800_v61 = vsub.f32 1.0, %v2285_v15 }
  0x48   : > { %1871 = vpow2.f32 %v763_v12 }
  0x49   : > { %1640 = vmatmul.mubr.f32.gmra.mrb[10].mxu0 %v2151_v8  ;;  %v2288_v8 = vpop.eup %1847  ;;  %1873 = vpow2.f32 %v765_v2  ;;  %3064 = vst [vmem:[#allocation10_spill] sm:$0xff] %v2347_v0  ;;  %v200_v2 = vld [vmem:[%s2026_s12 + $0x280] sm:$0xff]  ;;  %3067 = vst [vmem:[#allocation13_spill] sm:$0xff] %v2363_v47 }
  0x4a   : > { %1642 = vmatprep.mubr.f32.mxu0 %v2155_v10  ;;  %v190_v10 = vld [vmem:[%s2026_s12 + $0xa0] sm:$0xff]  ;;  %v2293_v21 = vpop.eup %1849 }
  0x4b   : > { %v2296_v22 = vpop.eup %1851 }
  0x4c   : > { %v2299_v26 = vpop.eup %1853 }
  0x4d   : > { %1643 = vmatmul.mubr.f32.gmra.mrb[12].mxu0 %v2165_v18  ;;  %v767_v18 = vmul.f32 1.442695, %v2179_v33 }
  0x4e   : > { %1645 = vmatprep.mubr.f32.mxu0 %v2169_v20  ;;  %v769_v20 = vmul.f32 1.442695, %v2186_v44 }
  0x4f   : > { %1875 = vpow2.f32 %v767_v18 }
  0x50   : > { %1877 = vpow2.f32 %v769_v20 }
  0x51   : > { %1646 = vmatmul.mubr.f32.gmra.mrb[14].mxu0 %v2176_v28  ;;  %v771_v28 = vmul.f32 1.442695, %v2189_v49 }
  0x52   : > { %1648 = vmatprep.mubr.f32.mxu0 %v2179_v33  ;;  %v2305_v33 = vmul.f32 %v190_v10, %v2066_v29  ;;  %v783_v10 = vmul.f32 1.442695, %v2219_v35 }
  0x53   : > { %1879 = vpow2.f32 %v771_v28 }
  0x54   : > { %3059 = vst [vmem:[#allocation5_spill] sm:$0xff] %v2305_v33  ;;  %1881 = vpow2.f32 %v773_v41 }
  0x55   : > { %1649 = vmatmul.mubr.f32.gmra.mrb[16].mxu0 %v2186_v44  ;;  %v2308_v44 = vpop.eup %1855 }
  0x56   : > { %1651 = vmatprep.mubr.f32.mxu0 %v2189_v49  ;;  %v775_v49 = vmul.f32 1.442695, %v2199_v1  ;;  %v2311_v43 = vpop.eup %1857 }
  0x57   : > { %v2317_v29 = vpop.eup %1859 }
  0x58   : > { %v2323_v4 = vpop.eup %1861  ;;  %1883 = vpow2.f32 %v775_v49  ;;  %v799_v49 = vsub.f32 1.0, %v2280_v9 }
  0x59   : > { %1652 = vmatmul.mubr.f32.gmra.mrb[18].mxu0 %v2196_v60  ;;  %v196_v60 = vld [vmem:[%s2026_s12 + $0x1c0] sm:$0xff]  ;;  %v2329_v32 = vpop.eup %1863  ;;  %1885 = vpow2.f32 %v777_v25 }
  0x5a   : > { %1654 = vmatprep.mubr.f32.mxu0 %v2199_v1  ;;  %v197_v1 = vld [vmem:[%s2026_s12 + $0x1f0] sm:$0xff]  ;;  %v2341_v58 = vpop.eup %1865  ;;  %v2350_v12 = vmul.f32 %v196_v60, %v2112_v53  ;;  %1887 = vpow2.f32 %v779_v3  ;;  %v785_v53 = vmul.f32 1.442695, %v2226_v51  ;;  %v789_v3 = vmul.f32 1.442695, %v2236_v6 }
  0x5b   : > { %v2354_v19 = vpop.eup %1867  ;;  %1889 = vpow2.f32 %v781_v17 }
  0x5c   : > { %3065 = vst [vmem:[#allocation11_spill] sm:$0xff] %v2350_v12  ;;  %v2360_v20 = vpop.eup %1869  ;;  %v227_v12 = vld [vmem:[%s2026_s12 + $0x198] sm:$0xff] }
  0x5d   : > { %1655 = vmatmul.mubr.f32.gmra.mrb[20].mxu0 %v2206_v13  ;;  %v2366_v41 = vpop.eup %1871 }
  0x5e   : > { %1657 = vmatprep.mubr.f32.mxu0 %v2209_v16  ;;  %v2338_v16 = vmul.f32 %v193_v57, %v2084_v39  ;;  %v2357_v39 = vmul.f32 %v197_v1, %v2116_v55  ;;  %v2370_v55 = vmul.f32 %v199_v31, %v2132_v63  ;;  %v2375_v46 = vpop.eup %1873  ;;  %v787_v63 = vmul.f32 1.442695, %v2229_v54  ;;  %v251_v31 = vld [vmem:[%s2026_s12 + $0x20] sm:$0xff] }
  0x5f   : > { %v2380_v25 = vpop.eup %1875 }
  0x60   : > { %3062 = vst [vmem:[#allocation8_spill] sm:$0xff] %v2338_v16  ;;  %3066 = vst [vmem:[#allocation12_spill] sm:$0xff] %v2357_v39  ;;  %v2384_v60 = vpop.eup %1877  ;;  %v285_v16 = vld [vmem:[%s2026_s12 + $0x88] sm:$0xff] }
  0x61   : > { %1658 = vmatmul.mubr.f32.gmra.mrb[22].mxu0 %v2216_v27  ;;  %v2344_v27 = vmul.f32 %v194_v59, %v2096_v45  ;;  %3068 = vst [vmem:[#allocation14_spill] sm:$0xff] %v2370_v55  ;;  %v2389_v56 = vpop.eup %1879 }
  0x62   : > { %1660 = vmatprep.mubr.f32.mxu0 %v2219_v35  ;;  %v2373_v35 = vmul.f32 %v200_v2, %v2144_v5  ;;  %v252_v2 = vld [vmem:[%s2026_s12 + $0x50] sm:$0xff] }
  0x63   : > { %3063 = vst [vmem:[#allocation9_spill] sm:$0xff] %v2344_v27 }
  0x64   : > { %3069 = vst [vmem:[#allocation15_spill] sm:$0xff] %v2373_v35 }
  0x65   : > { %1661 = vmatmul.mubr.f32.gmra.mrb[24].mxu0 %v2226_v51  ;;  %v802_v51 = vsub.f32 1.0, %v2293_v21 }
  0x66   : > { %1663 = vmatprep.mubr.f32.mxu0 %v2229_v54 }
  0x69   : > { %1664 = vmatmul.mubr.f32.gmra.mrb[26].mxu0 %v2236_v6 }
  0x6a   : > { %1666 = vmatprep.mubr.f32.mxu0 %v2239_v11 }
  0x6d   : > { %1667 = vmatmul.mubr.f32.gmra.mrb[28].mxu0 %v2245_v23 }
  0x6e   : > { %1669 = vmatprep.mubr.f32.mxu0 %v2248_v30 }
  0x71   : > { %1670 = vmatmul.mubr.f32.gmra.mrb[30].mxu0 %v2252_v38 }
  0x72   : > { %1522 = vmatprep.mubr.f32.mxu0 %v3013_v40  ;;  %v202_v40 = vld [vmem:[%s2026_s12 + $0x2e0] sm:$0xff] }
 0x108   : > { %v1626_v37 = vpop.f32.mrb[0].mxu0 }
 0x109   : > { %v673_v45 = vmul.f32 1.442695, %v1626_v37  ;;  %v512_v18 = vpop.f32.mrb[1].mxu0  ;;  %v2394_v37 = vpop.eup %1881 }
 0x10a   : > { %v671_v28 = vmul.f32 1.442695, %v512_v18  ;;  %v201_v18 = vld [vmem:[%s2026_s12 + $0x2b0] sm:$0xff] }
 0x10b   : > { %1891 = vpow2.f32 %v673_v45  ;;  %v793_v45 = vmul.f32 1.442695, %v2245_v23  ;;  %v795_v23 = vmul.f32 1.442695, %v2248_v30 }
 0x10c   : > { %1893 = vpow2.f32 %v671_v28  ;;  %v1629_v57 = vpop.f32.mrb[2].mxu0  ;;  %v2400_v28 = vpop.eup %1883 }
 0x10d   : > { %1895 = vpow2.f32 %v783_v10  ;;  %v677_v5 = vmul.f32 1.442695, %v1629_v57  ;;  %v522_v62 = vpop.f32.mrb[3].mxu0  ;;  %v2404_v13 = vpop.eup %1885 }
 0x10e   : > { %1897 = vpow2.f32 %v785_v53  ;;  %v675_v1 = vmul.f32 1.442695, %v522_v62  ;;  %v791_v62 = vmul.f32 1.442695, %v2239_v11  ;;  %v2423_v11 = vmul.f32 %v202_v40, %v2160_v14 }
 0x10f   : > { %1899 = vpow2.f32 %v677_v5 }
 0x110   : > { %1901 = vpow2.f32 %v675_v1  ;;  %v1632_v53 = vpop.f32.mrb[4].mxu0  ;;  %v2409_v1 = vpop.eup %1887  ;;  %3071 = vst [vmem:[#allocation17_spill] sm:$0xff] %v2423_v11  ;;  %v3081_v11 = vsub.f32 1.0, %v2311_v43 }
 0x111   : > { %1903 = vpow2.f32 %v787_v63  ;;  %v681_v5 = vmul.f32 1.442695, %v1632_v53  ;;  %v532_v17 = vpop.f32.mrb[5].mxu0  ;;  %v2414_v53 = vpop.eup %1889  ;;  %v2420_v63 = vmul.f32 %v201_v18, %v2148_v7  ;;  %v2439_v18 = vmul.f32 1.442695, %v2252_v38 }
 0x112   : > { %1905 = vpow2.f32 %v789_v3  ;;  %v679_v10 = vmul.f32 1.442695, %v532_v17  ;;  %v284_v3 = vld [vmem:[%s2026_s12 + $0x58] sm:$0xff] }
 0x113   : > { %1907 = vpow2.f32 %v681_v5  ;;  %3070 = vst [vmem:[#allocation16_spill] sm:$0xff] %v2420_v63 }
 0x114   : > { %1909 = vpow2.f32 %v679_v10  ;;  %v1635_v17 = vpop.f32.mrb[6].mxu0  ;;  %v219_v10 = vld [vmem:[%s2026_s12 + $0x18] sm:$0xff] }
 0x115   : > { %v1892_v6 = vpop.eup %1891  ;;  %1911 = vpow2.f32 %v791_v62  ;;  %v685_v5 = vmul.f32 1.442695, %v1635_v17  ;;  %v542_v57 = vpop.f32.mrb[7].mxu0 }
 0x116   : > { %v1894_v54 = vpop.eup %1893  ;;  %1913 = vpow2.f32 %v793_v45  ;;  %v683_v30 = vmul.f32 1.442695, %v542_v57  ;;  %v832_v59 = vmul.f32 %v1892_v6, %v800_v61 }
 0x117   : > { %v2435_v14 = vpop.eup %1895  ;;  %1915 = vpow2.f32 %v685_v5  ;;  %v831_v45 = vmul.f32 %v1894_v54, %v799_v49  ;;  %v222_v49 = vld [vmem:[%s2026_s12 + $0xa8] sm:$0xff]  ;;  %v254_v54 = vld [vmem:[%s2026_s12 + $0xb0] sm:$0xff] }
 0x118   : > { %v2443_v15 = vpop.eup %1897  ;;  %1917 = vpow2.f32 %v683_v30  ;;  %v1638_v61 = vpop.f32.mrb[8].mxu0  ;;  %v2445_v6 = vmul.f32 %v832_v59, %v220_v24  ;;  %v2447_v57 = vmul.f32 %v832_v59, %v252_v2  ;;  %v2449_v62 = vmul.f32 %v832_v59, %v284_v3  ;;  %v221_v59 = vld [vmem:[%s2026_s12 + $0x78] sm:$0xff] }
 0x119   : > { %v1900_v17 = vpop.eup %1899  ;;  %v689_v38 = vmul.f32 1.442695, %v1638_v61  ;;  %v552_v7 = vpop.f32.mrb[9].mxu0  ;;  %v2451_v5 = vmul.f32 %v831_v45, %v219_v10  ;;  %v2453_v9 = vmul.f32 %v831_v45, %v251_v31  ;;  %v2457_v30 = vmul.f32 %v831_v45, %v283_v52  ;;  %v253_v61 = vld [vmem:[%s2026_s12 + $0x80] sm:$0xff]  ;;  %v286_v45 = vld [vmem:[%s2026_s12 + $0xb8] sm:$0xff] }
 0x11a   : > { %3072 = vst [vmem:[#allocation18_spill] sm:$0xff] %v2449_v62  ;;  %v1902_v24 = vpop.eup %1901  ;;  %1919 = vpow2.f32 %v795_v23  ;;  %v687_v40 = vmul.f32 1.442695, %v552_v7  ;;  %v834_v3 = vmul.f32 %v1900_v17, %v802_v51  ;;  %v3074_v23 = vsub.f32 1.0, %v2288_v8 }
 0x11b   : > { %3073 = vst [vmem:[#allocation19_spill] sm:$0xff] %v2457_v30  ;;  %v2465_v10 = vpop.eup %1903  ;;  %1921 = vpow2.f32 %v689_v38  ;;  %v3076_v38 = vsub.f32 1.0, %v2299_v26  ;;  %v288_v26 = vld [vmem:[%s2026_s12 + $0x118] sm:$0xff] }
 0x11c   : > { %v833_v7 = vmul.f32 %v1902_v24, %v3074_v23  ;;  %v2474_v2 = vpop.eup %1905  ;;  %1923 = vpow2.f32 %v687_v40  ;;  %v1641_v21 = vpop.f32.mrb[10].mxu0  ;;  %v2476_v51 = vmul.f32 %v834_v3, %v222_v49  ;;  %v2478_v17 = vmul.f32 %v834_v3, %v254_v54  ;;  %v224_v23 = vld [vmem:[%s2026_s12 + $0x108] sm:$0xff]  ;;  %v256_v40 = vld [vmem:[%s2026_s12 + $0x110] sm:$0xff] }
 0x11d   : > { %v1908_v31 = vpop.eup %1907  ;;  %v693_v52 = vmul.f32 1.442695, %v1641_v21  ;;  %v562_v27 = vpop.f32.mrb[11].mxu0  ;;  %v2495_v21 = vmul.f32 %v834_v3, %v286_v45 }
 0x11e   : > { %v2482_v8 = vmul.f32 %v833_v7, %v221_v59  ;;  %v2484_v24 = vmul.f32 %v833_v7, %v253_v61  ;;  %v2488_v34 = vmul.f32 %v833_v7, %v285_v16  ;;  %v1910_v49 = vpop.eup %1909  ;;  %v691_v50 = vmul.f32 1.442695, %v562_v27  ;;  %v287_v59 = vld [vmem:[%s2026_s12 + $0xe8] sm:$0xff] }
 0x11f   : > { %v836_v33 = vmul.f32 %v1908_v31, %v3076_v38  ;;  %3077 = vst [vmem:[#allocation21_spill] sm:$0xff] %v2495_v21  ;;  %v2498_v48 = vpop.eup %1911  ;;  %1925 = vpow2.f32 %v693_v52  ;;  %v3078_v27 = vsub.f32 1.0, %v2296_v22  ;;  %v229_v21 = vld [vmem:[%s2026_s12 + $0x1f8] sm:$0xff] }
 0x120   : > { %3075 = vst [vmem:[#allocation20_spill] sm:$0xff] %v2488_v34  ;;  %v2507_v31 = vpop.eup %1913  ;;  %1927 = vpow2.f32 %v691_v50  ;;  %v1644_v3 = vpop.f32.mrb[12].mxu0  ;;  %v258_v50 = vld [vmem:[%s2026_s12 + $0x170] sm:$0xff] }
 0x121   : > { %v835_v7 = vmul.f32 %v1910_v49, %v3078_v27  ;;  %3079 = vst [vmem:[#allocation22_spill] sm:$0xff] %v2507_v31  ;;  %v2509_v45 = vmul.f32 %v836_v33, %v224_v23  ;;  %v2511_v52 = vmul.f32 %v836_v33, %v256_v40  ;;  %v1916_v16 = vpop.eup %1915  ;;  %v697_v61 = vmul.f32 1.442695, %v1644_v3  ;;  %v572_v54 = vpop.f32.mrb[13].mxu0  ;;  %v226_v27 = vld [vmem:[%s2026_s12 + $0x168] sm:$0xff]  ;;  %v225_v40 = vld [vmem:[%s2026_s12 + $0x138] sm:$0xff] }
 0x122   : > { %v1918_v23 = vpop.eup %1917  ;;  %v695_v62 = vmul.f32 1.442695, %v572_v54  ;;  %v838_v63 = vmul.f32 %v1916_v16, %v3081_v11  ;;  %v257_v31 = vld [vmem:[%s2026_s12 + $0x140] sm:$0xff]  ;;  %v2527_v38 = vmul.f32 %v836_v33, %v288_v26  ;;  %v289_v3 = vld [vmem:[%s2026_s12 + $0x148] sm:$0xff]  ;;  %v290_v11 = vld [vmem:[%s2026_s12 + $0x178] sm:$0xff]  ;;  %v3086_v26 = vsub.f32 1.0, %v2323_v4 }
 0x123   : > { %v2515_v22 = vmul.f32 %v835_v7, %v223_v36  ;;  %v2517_v49 = vmul.f32 %v835_v7, %v255_v42  ;;  %v2521_v30 = vmul.f32 %v835_v7, %v287_v59  ;;  %1929 = vpow2.f32 %v697_v61 }
 0x124   : > { %3082 = vst [vmem:[#allocation24_spill] sm:$0xff] %v2527_v38  ;;  %v3083_v59 = vsub.f32 1.0, %v2308_v44  ;;  %v2539_v16 = vpop.eup %1919  ;;  %1931 = vpow2.f32 %v695_v62  ;;  %v1647_v33 = vpop.f32.mrb[14].mxu0  ;;  %v2541_v7 = vmul.f32 %v838_v63, %v226_v27  ;;  %v2543_v61 = vmul.f32 %v838_v63, %v258_v50  ;;  %v228_v62 = vld [vmem:[%s2026_s12 + $0x1c8] sm:$0xff]  ;;  %v259_v38 = vld [vmem:[%s2026_s12 + $0x1a0] sm:$0xff] }
 0x125   : > { %3080 = vst [vmem:[#allocation23_spill] sm:$0xff] %v2521_v30  ;;  %v1922_v36 = vpop.eup %1921  ;;  %v701_v54 = vmul.f32 1.442695, %v1647_v33  ;;  %v582_v42 = vpop.f32.mrb[15].mxu0  ;;  %1933 = vpow2.f32 %v2439_v18  ;;  %v2560_v33 = vmul.f32 %v838_v63, %v290_v11  ;;  %v3088_v18 = vsub.f32 1.0, %v2317_v29 }
 0x126   : > { %v837_v43 = vmul.f32 %v1918_v23, %v3083_v59  ;;  %v260_v59 = vld [vmem:[%s2026_s12 + $0x1d0] sm:$0xff]  ;;  %v1924_v27 = vpop.eup %1923  ;;  %v699_v50 = vmul.f32 1.442695, %v582_v42  ;;  %v840_v30 = vmul.f32 %v1922_v36, %v3086_v26 }
 0x127   : > { %3087 = vst [vmem:[#allocation27_spill] sm:$0xff] %v2560_v33  ;;  %1935 = vpow2.f32 %v701_v54  ;;  %v839_v42 = vmul.f32 %v1924_v27, %v3088_v18  ;;  %v230_v27 = vld [vmem:[%s2026_s12 + $0x228] sm:$0xff]  ;;  %v3094_v54 = vsub.f32 1.0, %v2341_v58 }
 0x128   : > { %v2547_v44 = vmul.f32 %v837_v43, %v225_v40  ;;  %v2549_v23 = vmul.f32 %v837_v43, %v257_v31  ;;  %v2553_v0 = vmul.f32 %v837_v43, %v289_v3  ;;  %v291_v40 = vld [vmem:[%s2026_s12 + $0x1a8] sm:$0xff]  ;;  %v292_v43 = vld [vmem:[%s2026_s12 + $0x1d8] sm:$0xff]  ;;  %1937 = vpow2.f32 %v699_v50  ;;  %v1650_v4 = vpop.f32.mrb[16].mxu0  ;;  %v262_v50 = vld [vmem:[%s2026_s12 + $0x230] sm:$0xff] }
 0x129   : > { %v2570_v36 = vmul.f32 %v840_v30, %v228_v62  ;;  %v2572_v63 = vmul.f32 %v840_v30, %v260_v59  ;;  %v1926_v11 = vpop.eup %1925  ;;  %v705_v26 = vmul.f32 1.442695, %v1650_v4  ;;  %v592_v31 = vpop.f32.mrb[17].mxu0  ;;  %v2576_v34 = vmul.f32 %v839_v42, %v227_v12  ;;  %v261_v4 = vld [vmem:[%s2026_s12 + $0x200] sm:$0xff]  ;;  %v294_v59 = vld [vmem:[%s2026_s12 + $0x238] sm:$0xff] }
 0x12a   : > { %3084 = vst [vmem:[#allocation25_spill] sm:$0xff] %v2549_v23  ;;  %3085 = vst [vmem:[#allocation26_spill] sm:$0xff] %v2553_v0  ;;  %v2578_v29 = vmul.f32 %v839_v42, %v259_v38  ;;  %v2582_v18 = vmul.f32 %v839_v42, %v291_v40  ;;  %v1928_v62 = vpop.eup %1927  ;;  %v703_v3 = vmul.f32 1.442695, %v592_v31  ;;  %v842_v0 = vmul.f32 %v1926_v11, %v3094_v54  ;;  %v293_v31 = vld [vmem:[%s2026_s12 + $0x208] sm:$0xff] }
 0x12b   : > { %3089 = vst [vmem:[#allocation28_spill] sm:$0xff] %v2570_v36  ;;  %3090 = vst [vmem:[#allocation29_spill] sm:$0xff] %v2572_v63  ;;  %v2589_v33 = vmul.f32 %v840_v30, %v292_v43  ;;  %1939 = vpow2.f32 %v705_v26  ;;  %v3096_v40 = vsub.f32 1.0, %v2329_v32  ;;  %v263_v36 = vld [vmem:[%s2026_s12 + $0x260] sm:$0xff]  ;;  %v815_v26 = vsub.f32 1.0, %v2380_v25 }
 0x12c   : > { %3091 = vst [vmem:[#allocation30_spill] sm:$0xff] %v2576_v34  ;;  %3092 = vst [vmem:[#allocation31_spill] sm:$0xff] %v2578_v29  ;;  %1941 = vpow2.f32 %v703_v3  ;;  %v1653_v58 = vpop.f32.mrb[18].mxu0  ;;  %v2599_v30 = vmul.f32 %v842_v0, %v230_v27  ;;  %v2601_v43 = vmul.f32 %v842_v0, %v262_v50  ;;  %v264_v3 = vld [vmem:[%s2026_s12 + $0x290] sm:$0xff]  ;;  %v231_v27 = vld [vmem:[%s2026_s12 + $0x258] sm:$0xff]  ;;  %v3097_v50 = vsub.f32 1.0, %v2360_v20 }
 0x12d   : > { %3093 = vst [vmem:[#allocation32_spill] sm:$0xff] %v2582_v18  ;;  %3095 = vst [vmem:[#allocation33_spill] sm:$0xff] %v2589_v33  ;;  %v841_v42 = vmul.f32 %v1928_v62, %v3096_v40  ;;  %v1930_v11 = vpop.eup %1929  ;;  %v709_v38 = vmul.f32 1.442695, %v1653_v58  ;;  %v602_v32 = vpop.f32.mrb[19].mxu0  ;;  %v232_v40 = vld [vmem:[%s2026_s12 + $0x288] sm:$0xff]  ;;  %v2618_v54 = vmul.f32 %v842_v0, %v294_v59 }
 0x12e   : > { %v1932_v29 = vpop.eup %1931  ;;  %v707_v63 = vmul.f32 1.442695, %v602_v32  ;;  %v844_v34 = vmul.f32 %v1930_v11, %v3097_v50  ;;  %v3100_v58 = vsub.f32 1.0, %v2354_v19  ;;  %v816_v59 = vsub.f32 1.0, %v2384_v60  ;;  %v296_v60 = vld [vmem:[%s2026_s12 + $0x298] sm:$0xff] }
 0x12f   : > { %v2606_v12 = vmul.f32 %v841_v42, %v229_v21  ;;  %v2608_v62 = vmul.f32 %v841_v42, %v261_v4  ;;  %v2616_v23 = vmul.f32 %v841_v42, %v293_v31  ;;  %3099 = vst [vmem:[#allocation35_spill] sm:$0xff] %v2618_v54  ;;  %1943 = vpow2.f32 %v709_v38  ;;  %v2626_v20 = vpop.eup %1933  ;;  %v268_v54 = vld [vmem:[%s2026_s12 + $0x350] sm:$0xff]  ;;  %v235_v18 = vld [vmem:[%s2026_s12 + $0x318] sm:$0xff] }
 0x130   : > { %v843_v32 = vmul.f32 %v1932_v29, %v3100_v58  ;;  %1945 = vpow2.f32 %v707_v63  ;;  %v1656_v42 = vpop.f32.mrb[20].mxu0  ;;  %v2628_v31 = vmul.f32 %v844_v34, %v232_v40  ;;  %v2630_v0 = vmul.f32 %v844_v34, %v264_v3  ;;  %v234_v29 = vld [vmem:[%s2026_s12 + $0x2e8] sm:$0xff]  ;;  %v266_v63 = vld [vmem:[%s2026_s12 + $0x2f0] sm:$0xff] }
 0x131   : > { %3098 = vst [vmem:[#allocation34_spill] sm:$0xff] %v2616_v23  ;;  %v1936_v38 = vpop.eup %1935  ;;  %v713_v11 = vmul.f32 1.442695, %v1656_v42  ;;  %v612_v50 = vpop.f32.mrb[21].mxu0  ;;  %v295_v58 = vld [vmem:[%s2026_s12 + $0x268] sm:$0xff]  ;;  %v233_v42 = vld [vmem:[%s2026_s12 + $0x2b8] sm:$0xff] }
 0x132   : > { %3101 = vst [vmem:[#allocation36_spill] sm:$0xff] %v2630_v0  ;;  %v2634_v4 = vmul.f32 %v843_v32, %v231_v27  ;;  %v2636_v19 = vmul.f32 %v843_v32, %v263_v36  ;;  %v1938_v3 = vpop.eup %1937  ;;  %v711_v21 = vmul.f32 1.442695, %v612_v50  ;;  %v3104_v27 = vsub.f32 1.0, %v2375_v46  ;;  %v265_v23 = vld [vmem:[%s2026_s12 + $0x2c0] sm:$0xff]  ;;  %v236_v50 = vld [vmem:[%s2026_s12 + $0x348] sm:$0xff] }
 0x133   : > { %1947 = vpow2.f32 %v713_v11  ;;  %v3105_v25 = vsub.f32 1.0, %v2366_v41  ;;  %v2676_v47 = vmul.f32 %v843_v32, %v295_v58  ;;  %v299_v0 = vld [vmem:[%s2026_s12 + $0x328] sm:$0xff] }
 0x134   : > { %3102 = vst [vmem:[#allocation37_spill] sm:$0xff] %v2634_v4  ;;  %3103 = vst [vmem:[#allocation38_spill] sm:$0xff] %v2636_v19  ;;  %v2648_v36 = vmul.f32 %v1936_v38, %v3104_v27  ;;  %1949 = vpow2.f32 %v711_v21  ;;  %v1659_v46 = vpop.f32.mrb[22].mxu0  ;;  %v300_v21 = vld [vmem:[%s2026_s12 + $0x358] sm:$0xff]  ;;  %v267_v19 = vld [vmem:[%s2026_s12 + $0x320] sm:$0xff]  ;;  %v2681_v4 = vmul.f32 %v844_v34, %v296_v60 }
 0x135   : > { %v2657_v40 = vmul.f32 %v1938_v3, %v3105_v25  ;;  %v1940_v27 = vpop.eup %1939  ;;  %v717_v41 = vmul.f32 1.442695, %v1659_v46  ;;  %v622_v3 = vpop.f32.mrb[23].mxu0 }
 0x136   : > { %v2662_v38 = vmul.f32 %v2648_v36, %v234_v29  ;;  %v2665_v11 = vmul.f32 %v2648_v36, %v266_v63  ;;  %v1942_v29 = vpop.eup %1941  ;;  %v848_v33 = vmul.f32 %v1940_v27, %v816_v59  ;;  %v715_v63 = vmul.f32 1.442695, %v622_v3 }
 0x137   : > { %v2670_v25 = vmul.f32 %v2657_v40, %v233_v42  ;;  %v2673_v39 = vmul.f32 %v2657_v40, %v265_v23  ;;  %v847_v46 = vmul.f32 %v1942_v29, %v815_v26  ;;  %1951 = vpow2.f32 %v717_v41  ;;  %v238_v26 = vld [vmem:[%s2026_s12 + $0x3a8] sm:$0xff]  ;;  %v270_v41 = vld [vmem:[%s2026_s12 + $0x3b0] sm:$0xff] }
 0x138   : > { %3106 = vst [vmem:[#allocation39_spill] sm:$0xff] %v2665_v11  ;;  %v880_v59 = vmul.f32 %v848_v33, %v236_v50  ;;  %v983_v58 = vmul.f32 %v848_v33, %v268_v54  ;;  %1953 = vpow2.f32 %v715_v63  ;;  %v1662_v27 = vpop.f32.mrb[24].mxu0  ;;  %v2689_v34 = vmul.f32 %v848_v33, %v300_v21  ;;  %v237_v54 = vld [vmem:[%s2026_s12 + $0x378] sm:$0xff]  ;;  %v301_v21 = vld [vmem:[%s2026_s12 + $0x388] sm:$0xff] }
 0x139   : > { %3107 = vst [vmem:[#allocation40_spill] sm:$0xff] %v2670_v25  ;;  %3108 = vst [vmem:[#allocation41_spill] sm:$0xff] %v2673_v39  ;;  %v1944_v60 = vpop.eup %1943  ;;  %v879_v3 = vmul.f32 %v847_v46, %v235_v18  ;;  %v982_v42 = vmul.f32 %v847_v46, %v267_v19  ;;  %v721_v29 = vmul.f32 1.442695, %v1662_v27  ;;  %v632_v23 = vpop.f32.mrb[25].mxu0  ;;  %v2693_v55 = vmul.f32 %v847_v46, %v299_v0  ;;  %v269_v39 = vld [vmem:[%s2026_s12 + $0x380] sm:$0xff] }
 0x13a   : > { %v1946_v32 = vpop.eup %1945  ;;  %v3109_v63 = vsub.f32 1.0, %v2394_v37  ;;  %v719_v33 = vmul.f32 1.442695, %v632_v23  ;;  %v3110_v0 = vsub.f32 1.0, %v2389_v56  ;;  %v302_v11 = vld [vmem:[%s2026_s12 + $0x3b8] sm:$0xff]  ;;  %v272_v56 = vld [vmem:[%s2026_s12 + $0x410] sm:$0xff] }
 0x13b   : > { %v1704_v19 = vpack.c.bf16 %v880_v59, %v879_v3  ;;  %v1736_v27 = vpack.c.bf16 %v983_v58, %v982_v42  ;;  %1955 = vpow2.f32 %v721_v29  ;;  %v1768_v23 = vpack.c.bf16 %v2689_v34, %v2693_v55  ;;  %v240_v58 = vld [vmem:[%s2026_s12 + $0x408] sm:$0xff] }
 0x13c   : > { %v850_v35 = vmul.f32 %v1944_v60, %v3109_v63  ;;  %v849_v46 = vmul.f32 %v1946_v32, %v3110_v0  ;;  %1957 = vpow2.f32 %v719_v33  ;;  %v1665_v37 = vpop.f32.mrb[26].mxu0  ;;  %v826_v29 = vsub.f32 1.0, %v2474_v2  ;;  %v3152_v34 = vld [vmem:[#allocation3_spill] sm:$0xff] }
 0x13d   : > { %v1948_v60 = vpop.eup %1947  ;;  %1705 = vmatprep.subr.bf16.mxu1 %v1704_v19  ;;  %1737 = vmatprep.subr.bf16.mxu0 %v1736_v27  ;;  %v725_v32 = vmul.f32 1.442695, %v1665_v37  ;;  %v642_v3 = vpop.f32.mrb[27].mxu0  ;;  %v3111_v63 = vpack.c.bf16 %v2445_v6, %v2451_v5  ;;  %v3112_v33 = vpack.c.bf16 %v2447_v57, %v2453_v9  ;;  %v271_v27 = vld [vmem:[%s2026_s12 + $0x3e0] sm:$0xff]  ;;  %v3114_v6 = vsub.f32 1.0, %v2400_v28  ;;  %v274_v28 = vld [vmem:[%s2026_s12 + $0x470] sm:$0xff] }
 0x13e   : > { %v882_v50 = vmul.f32 %v850_v35, %v238_v26  ;;  %v985_v25 = vmul.f32 %v850_v35, %v270_v41  ;;  %v881_v59 = vmul.f32 %v849_v46, %v237_v54  ;;  %v984_v42 = vmul.f32 %v849_v46, %v269_v39  ;;  %v1950_v41 = vpop.eup %1949  ;;  %v239_v54 = vld [vmem:[%s2026_s12 + $0x3d8] sm:$0xff] }
 0x13f   : > { %v2710_v26 = vmul.f32 %v849_v46, %v301_v21  ;;  %1707 = vmatpush3.bf16.xpose.msra.mxu1 %v3111_v63  ;;  %1739 = vmatpush3.bf16.xpose.msra.mxu0 %v3112_v33  ;;  %v3113_v39 = vsub.f32 1.0, %v2404_v13  ;;  %v723_v0 = vmul.f32 1.442695, %v642_v3  ;;  %v2723_v37 = vmul.f32 %v850_v35, %v302_v11  ;;  %v303_v21 = vld [vmem:[%s2026_s12 + $0x3e8] sm:$0xff]  ;;  %v304_v63 = vld [vmem:[%s2026_s12 + $0x418] sm:$0xff] }
 0x140   : > { %v1708_v46 = vpack.c.bf16 %v882_v50, %v881_v59  ;;  %v1740_v18 = vpack.c.bf16 %v985_v25, %v984_v42  ;;  %v851_v5 = vmul.f32 %v1950_v41, %v3114_v6  ;;  %1959 = vpow2.f32 %v725_v32  ;;  %v1668_v13 = vpop.f32.mrb[28].mxu0  ;;  %v241_v3 = vld [vmem:[%s2026_s12 + $0x438] sm:$0xff] }
 0x141   : > { %v852_v19 = vmul.f32 %v1948_v60, %v3113_v39  ;;  %1961 = vpow2.f32 %v723_v0  ;;  %v1952_v11 = vpop.eup %1951  ;;  %v242_v60 = vld [vmem:[%s2026_s12 + $0x468] sm:$0xff]  ;;  %v729_v59 = vmul.f32 1.442695, %v1668_v13  ;;  %v652_v42 = vpop.f32.mrb[29].mxu0  ;;  %v827_v32 = vsub.f32 1.0, %v2498_v48  ;;  %v273_v39 = vld [vmem:[%s2026_s12 + $0x440] sm:$0xff] }
 0x142   : > { %1709 = vmatprep.subr.bf16.mxu1 %v1708_v46  ;;  %1741 = vmatprep.subr.bf16.mxu0 %v1740_v18  ;;  %v883_v50 = vmul.f32 %v851_v5, %v239_v54  ;;  %v986_v25 = vmul.f32 %v851_v5, %v271_v27  ;;  %v3115_v41 = vsub.f32 1.0, %v2414_v53  ;;  %v727_v0 = vmul.f32 1.442695, %v652_v42  ;;  %v305_v54 = vld [vmem:[%s2026_s12 + $0x448] sm:$0xff]  ;;  %v249_v48 = vld [vmem:[%s2026_s12 + $0x5b8] sm:$0xff] }
 0x143   : > { %v884_v57 = vmul.f32 %v852_v19, %v240_v58  ;;  %v987_v9 = vmul.f32 %v852_v19, %v272_v56  ;;  %v2733_v58 = vmul.f32 %v851_v5, %v303_v21  ;;  %v1954_v56 = vpop.eup %1953  ;;  %v2740_v18 = vmul.f32 %v852_v19, %v304_v63  ;;  %v306_v5 = vld [vmem:[%s2026_s12 + $0x478] sm:$0xff]  ;;  %v297_v13 = vld [vmem:[%s2026_s12 + $0x2c8] sm:$0xff] }
 0x144   : > { %v854_v33 = vmul.f32 %v1952_v11, %v3115_v41  ;;  %v3116_v21 = vsub.f32 1.0, %v2409_v1  ;;  %1963 = vpow2.f32 %v729_v59  ;;  %v1671_v19 = vpop.f32.mrb[30].mxu0  ;;  %v3119_v41 = vsub.f32 1.0, %v2443_v15 }
 0x145   : > { %v1712_v27 = vpack.c.bf16 %v884_v57, %v883_v50  ;;  %v1744_v46 = vpack.c.bf16 %v987_v9, %v986_v25  ;;  %1965 = vpow2.f32 %v727_v0  ;;  %v1956_v11 = vpop.eup %1955  ;;  %v243_v9 = vld [vmem:[%s2026_s12 + $0x498] sm:$0xff]  ;;  %v244_v50 = vld [vmem:[%s2026_s12 + $0x4c8] sm:$0xff]  ;;  %v276_v25 = vld [vmem:[%s2026_s12 + $0x4d0] sm:$0xff]  ;;  %v662_v59 = vpop.f32.mrb[31].mxu0  ;;  %v3124_v2 = vsub.f32 1.0, %v2465_v10 }
 0x146   : > { %v853_v6 = vmul.f32 %v1954_v56, %v3116_v21  ;;  %v2747_v35 = vmul.f32 %v854_v33, %v242_v60  ;;  %v2749_v53 = vmul.f32 %v854_v33, %v274_v28  ;;  %v733_v60 = vmul.f32 1.442695, %v1671_v19  ;;  %v1958_v42 = vpop.eup %1957  ;;  %v275_v0 = vld [vmem:[%s2026_s12 + $0x4a0] sm:$0xff]  ;;  %v307_v19 = vld [vmem:[%s2026_s12 + $0x4a8] sm:$0xff] }
 0x147   : > { %v3117_v56 = vpack.c.bf16 %v2476_v51, %v2482_v8  ;;  %v731_v21 = vmul.f32 1.442695, %v662_v59  ;;  %v2771_v63 = vmul.f32 %v854_v33, %v306_v5 }
 0x148   : > { %v2753_v57 = vmul.f32 %v853_v6, %v241_v3  ;;  %v2755_v1 = vmul.f32 %v853_v6, %v273_v39  ;;  %v2760_v28 = vmul.f32 %v853_v6, %v305_v54  ;;  %v3118_v3 = vpack.c.bf16 %v2478_v17, %v2484_v24  ;;  %v308_v54 = vld [vmem:[%s2026_s12 + $0x4d8] sm:$0xff] }
 0x149   : > { %1711 = vmatpush3.bf16.xpose.msra.mxu1 %v3117_v56  ;;  %v856_v39 = vmul.f32 %v1956_v11, %v3119_v41  ;;  %v2776_v6 = vmul.f32 %v2657_v40, %v297_v13  ;;  %v3120_v17 = vsub.f32 1.0, %v2435_v14  ;;  %1967 = vpow2.f32 %v733_v60  ;;  %v298_v24 = vld [vmem:[%s2026_s12 + $0x2f8] sm:$0xff]  ;;  %v246_v14 = vld [vmem:[%s2026_s12 + $0x528] sm:$0xff]  ;;  %v278_v13 = vld [vmem:[%s2026_s12 + $0x530] sm:$0xff] }
 0x14a   : > { %1743 = vmatpush3.bf16.xpose.msra.mxu0 %v3118_v3  ;;  %1713 = vmatprep.subr.bf16.mxu1 %v1712_v27  ;;  %v1716_v51 = vpack.c.bf16 %v2747_v35, %v2753_v57  ;;  %v1748_v15 = vpack.c.bf16 %v2749_v53, %v2755_v1  ;;  %1969 = vpow2.f32 %v731_v21  ;;  %v1780_v35 = vpack.c.bf16 %v2771_v63, %v2760_v28  ;;  %v1960_v27 = vpop.eup %1959  ;;  %v310_v57 = vld [vmem:[%s2026_s12 + $0x538] sm:$0xff]  ;;  %v3122_v3 = vld [vmem:[#allocation16_spill] sm:$0xff]  ;;  %v1981_v28 = vld [vmem:[%s2026_s12 + $0x4e8] sm:$0xff] }
 0x14b   : > { %1745 = vmatprep.subr.bf16.mxu0 %v1744_v46  ;;  %v855_v8 = vmul.f32 %v1958_v42, %v3120_v17  ;;  %v2785_v33 = vmul.f32 %v856_v39, %v244_v50  ;;  %v2787_v40 = vmul.f32 %v856_v39, %v276_v25  ;;  %v2799_v11 = vmul.f32 %v856_v39, %v308_v54  ;;  %v1962_v1 = vpop.eup %1961  ;;  %v3121_v50 = vld [vmem:[#allocation22_spill] sm:$0xff]  ;;  %v245_v60 = vld [vmem:[%s2026_s12 + $0x4f8] sm:$0xff] }
 0x14c   : > { %v828_v25 = vsub.f32 1.0, %v3121_v50  ;;  %v858_v59 = vmul.f32 %v1960_v27, %v826_v29  ;;  %v277_v42 = vld [vmem:[%s2026_s12 + $0x500] sm:$0xff]  ;;  %v2809_v56 = vmul.f32 %v2648_v36, %v298_v24  ;;  %v3123_v41 = vld [vmem:[#allocation17_spill] sm:$0xff]  ;;  %v857_v29 = vmul.f32 %v1962_v1, %v3124_v2 }
 0x14d   : > { %v2791_v46 = vmul.f32 %v855_v8, %v243_v9  ;;  %v2793_v5 = vmul.f32 %v855_v8, %v275_v0  ;;  %v2797_v53 = vmul.f32 %v855_v8, %v307_v19  ;;  %v309_v9 = vld [vmem:[%s2026_s12 + $0x508] sm:$0xff]  ;;  %v830_v50 = vsub.f32 1.0, %v2626_v20 }
 0x14e   : > { %v890_v54 = vmul.f32 %v858_v59, %v246_v14  ;;  %v993_v36 = vmul.f32 %v858_v59, %v278_v13  ;;  %v2821_v17 = vmul.f32 %v858_v59, %v310_v57  ;;  %v1798_v8 = vpack.c.bf16 %v2809_v56, %v2776_v6  ;;  %v1964_v24 = vpop.eup %1963  ;;  %v247_v57 = vld [vmem:[%s2026_s12 + $0x558] sm:$0xff] }
 0x14f   : > { %v1720_v0 = vpack.c.bf16 %v2785_v33, %v2791_v46  ;;  %v1752_v21 = vpack.c.bf16 %v2787_v40, %v2793_v5  ;;  %v1784_v19 = vpack.c.bf16 %v2799_v11, %v2797_v53  ;;  %v889_v33 = vmul.f32 %v857_v29, %v245_v60  ;;  %v248_v40 = vld [vmem:[%s2026_s12 + $0x588] sm:$0xff]  ;;  %v280_v46 = vld [vmem:[%s2026_s12 + $0x590] sm:$0xff]  ;;  %v312_v5 = vld [vmem:[%s2026_s12 + $0x598] sm:$0xff]  ;;  %v1966_v1 = vpop.eup %1965 }
 0x150   : > { %v992_v27 = vmul.f32 %v857_v29, %v277_v42  ;;  %v2827_v10 = vmul.f32 %v857_v29, %v309_v9  ;;  %v3125_v14 = vpack.c.bf16 %v2509_v45, %v2515_v22  ;;  %v3126_v13 = vpack.c.bf16 %v2511_v52, %v2517_v49  ;;  %v279_v60 = vld [vmem:[%s2026_s12 + $0x560] sm:$0xff]  ;;  %v311_v42 = vld [vmem:[%s2026_s12 + $0x568] sm:$0xff] }
 0x151   : > { %v860_v59 = vmul.f32 %v1964_v24, %v828_v25  ;;  %v829_v9 = vsub.f32 1.0, %v2539_v16  ;;  %v1724_v20 = vpack.c.bf16 %v890_v54, %v889_v33  ;;  %v859_v45 = vmul.f32 %v1966_v1, %v827_v32  ;;  %v314_v54 = vld [vmem:[%s2026_s12 + $0x5f8] sm:$0xff]  ;;  %v281_v32 = vld [vmem:[%s2026_s12 + $0x5c0] sm:$0xff]  ;;  %v1983_v11 = vld [vmem:[%s2026_s12 + $0x548] sm:$0xff] }
 0x152   : > { %1715 = vmatpush3.bf16.xpose.msra.mxu1 %v3125_v14  ;;  %1747 = vmatpush3.bf16.xpose.msra.mxu0 %v3126_v13  ;;  %v1756_v2 = vpack.c.bf16 %v993_v36, %v992_v27  ;;  %v1788_v49 = vpack.c.bf16 %v2821_v17, %v2827_v10  ;;  %v313_v27 = vld [vmem:[%s2026_s12 + $0x5c8] sm:$0xff] }
 0x153   : > { %1717 = vmatprep.subr.bf16.mxu1 %v1716_v51  ;;  %1749 = vmatprep.subr.bf16.mxu0 %v1748_v15  ;;  %v892_v52 = vmul.f32 %v860_v59, %v248_v40  ;;  %v995_v22 = vmul.f32 %v860_v59, %v280_v46  ;;  %v2845_v25 = vmul.f32 %v860_v59, %v312_v5  ;;  %v1968_v29 = vpop.eup %1967  ;;  %v250_v51 = vld [vmem:[%s2026_s12 + $0x5e8] sm:$0xff]  ;;  %v282_v15 = vld [vmem:[%s2026_s12 + $0x5f0] sm:$0xff] }
 0x154   : > { %v891_v16 = vmul.f32 %v859_v45, %v247_v57  ;;  %v994_v24 = vmul.f32 %v859_v45, %v279_v60  ;;  %v2849_v14 = vmul.f32 %v859_v45, %v311_v42  ;;  %v1970_v36 = vpop.eup %1969  ;;  %v862_v33 = vmul.f32 %v1968_v29, %v830_v50  ;;  %v3128_v50 = vld [vmem:[#allocation25_spill] sm:$0xff]  ;;  %v1985_v17 = vld [vmem:[%s2026_s12 + $0x5a8] sm:$0xff] }
 0x155   : > { %v861_v1 = vmul.f32 %v1970_v36, %v829_v9  ;;  %v3127_v45 = vpack.c.bf16 %v2541_v7, %v2547_v44  ;;  %v3133_v7 = vld [vmem:[#allocation29_spill] sm:$0xff]  ;;  %v3134_v44 = vld [vmem:[#allocation31_spill] sm:$0xff] }
 0x156   : > { %v1728_v40 = vpack.c.bf16 %v892_v52, %v891_v16  ;;  %v1760_v46 = vpack.c.bf16 %v995_v22, %v994_v24  ;;  %v1792_v5 = vpack.c.bf16 %v2845_v25, %v2849_v14  ;;  %v894_v13 = vmul.f32 %v862_v33, %v250_v51  ;;  %v3130_v16 = vld [vmem:[#allocation28_spill] sm:$0xff]  ;;  %v3131_v24 = vld [vmem:[#allocation30_spill] sm:$0xff] }
 0x157   : > { %v997_v59 = vmul.f32 %v862_v33, %v282_v15  ;;  %v2857_v57 = vmul.f32 %v862_v33, %v314_v54  ;;  %v893_v60 = vmul.f32 %v861_v1, %v249_v48  ;;  %v996_v39 = vmul.f32 %v861_v1, %v281_v32  ;;  %v3138_v54 = vld [vmem:[#allocation37_spill] sm:$0xff]  ;;  %v205_v32 = vld [vmem:[%s2026_s12 + $0x370] sm:$0xff] }
 0x158   : > { %v2859_v42 = vmul.f32 %v861_v1, %v313_v27  ;;  %v3129_v52 = vpack.c.bf16 %v2543_v61, %v3128_v50  ;;  %v3132_v51 = vpack.c.bf16 %v3130_v16, %v3131_v24  ;;  %v3135_v15 = vpack.c.bf16 %v3133_v7, %v3134_v44  ;;  %v206_v27 = vld [vmem:[%s2026_s12 + $0x3a0] sm:$0xff]  ;;  %v3146_v1 = vld [vmem:[#allocation41_spill] sm:$0xff]  ;;  %v3150_v24 = vld [vmem:[#allocation19_spill] sm:$0xff] }
 0x159   : > { %v1732_v9 = vpack.c.bf16 %v894_v13, %v893_v60  ;;  %v1764_v22 = vpack.c.bf16 %v997_v59, %v996_v39  ;;  %v3136_v61 = vpack.c.bf16 %v2599_v30, %v2606_v12  ;;  %v3137_v39 = vpack.c.bf16 %v2601_v43, %v2608_v62  ;;  %v1971_v12 = vld [vmem:[%s2026_s12 + $0x308] sm:$0xff]  ;;  %v1972_v43 = vld [vmem:[%s2026_s12 + $0x338] sm:$0xff]  ;;  %v3149_v16 = vld [vmem:[#allocation18_spill] sm:$0xff] }
 0x15a   : > { %1719 = vmatpush3.bf16.xpose.msra.mxu1 %v3127_v45  ;;  %1751 = vmatpush3.bf16.xpose.msra.mxu0 %v3129_v52  ;;  %v1796_v29 = vpack.c.bf16 %v2857_v57, %v2859_v42  ;;  %v3139_v36 = vpack.c.bf16 %v2628_v31, %v3138_v54  ;;  %v3143_v31 = vld [vmem:[#allocation40_spill] sm:$0xff]  ;;  %v1973_v59 = vld [vmem:[%s2026_s12 + $0x368] sm:$0xff]  ;;  %v1974_v45 = vld [vmem:[%s2026_s12 + $0x398] sm:$0xff]  ;;  %v3151_v55 = vpack.c.bf16 %v3149_v16, %v3150_v24 }
 0x15b   : > { %1721 = vmatprep.subr.bf16.mxu1 %v1720_v0  ;;  %1753 = vmatprep.subr.bf16.mxu0 %v1752_v21  ;;  %v203_v0 = vld [vmem:[%s2026_s12 + $0x310] sm:$0xff]  ;;  %v204_v21 = vld [vmem:[%s2026_s12 + $0x340] sm:$0xff]  ;;  %v1190_v60 = vmul.f32 %v1973_v59, %v205_v32  ;;  %v1191_v50 = vmul.f32 %v1974_v45, %v206_v27  ;;  %v3155_v7 = vpack.c.bf16 %v2723_v37, %v2710_v26  ;;  %v1975_v44 = vld [vmem:[%s2026_s12 + $0x3c8] sm:$0xff] }
 0x15c   : > { %v1188_v30 = vmul.f32 %v1971_v12, %v203_v0  ;;  %v1189_v62 = vmul.f32 %v1972_v43, %v204_v21  ;;  %v209_v21 = vld [vmem:[%s2026_s12 + $0x430] sm:$0xff]  ;;  %v210_v54 = vld [vmem:[%s2026_s12 + $0x460] sm:$0xff]  ;;  %v3159_v37 = vld [vmem:[#allocation5_spill] sm:$0xff]  ;;  %v3162_v12 = vpack.c.bf16 %v2740_v18, %v2733_v58  ;;  %v3191_v25 = vpack.c.bf16 %v3123_v41, %v3122_v3 }
 0x15d   : > { %v1804_v52 = vpack.c.bf16 %v1191_v50, %v1190_v60  ;;  %v211_v27 = vld [vmem:[%s2026_s12 + $0x490] sm:$0xff]  ;;  %v3167_v59 = vld [vmem:[#allocation6_spill] sm:$0xff]  ;;  %v1979_v18 = vld [vmem:[%s2026_s12 + $0x488] sm:$0xff] }
 0x15e   : > { %v1800_v33 = vpack.c.bf16 %v1189_v62, %v1188_v30  ;;  %v1977_v30 = vld [vmem:[%s2026_s12 + $0x428] sm:$0xff]  ;;  %v1978_v62 = vld [vmem:[%s2026_s12 + $0x458] sm:$0xff]  ;;  %v1196_v60 = vmul.f32 %v1979_v18, %v211_v27  ;;  %v3170_v24 = vld [vmem:[#allocation26_spill] sm:$0xff] }
 0x15f   : > { %v1194_v43 = vmul.f32 %v1977_v30, %v209_v21  ;;  %v1980_v45 = vld [vmem:[%s2026_s12 + $0x4b8] sm:$0xff]  ;;  %v3169_v16 = vld [vmem:[#allocation27_spill] sm:$0xff]  ;;  %v3182_v30 = vld [vmem:[#allocation34_spill] sm:$0xff] }
 0x162   : > { %1723 = vmatpush3.bf16.xpose.msra.mxu1 %v3132_v51  ;;  %1755 = vmatpush3.bf16.xpose.msra.mxu0 %v3135_v15 }
 0x163   : > { %1725 = vmatprep.subr.bf16.mxu1 %v1724_v20  ;;  %1757 = vmatprep.subr.bf16.mxu0 %v1756_v2  ;;  %v3140_v20 = vld [vmem:[#allocation36_spill] sm:$0xff]  ;;  %v3141_v2 = vld [vmem:[#allocation38_spill] sm:$0xff] }
 0x164   : > { %v3142_v48 = vpack.c.bf16 %v3140_v20, %v3141_v2  ;;  %v3157_v20 = vld [vmem:[#allocation20_spill] sm:$0xff] }
 0x165   : > { %v3160_v2 = vld [vmem:[#allocation4_spill] sm:$0xff] }
 0x16a   : > { %1727 = vmatpush3.bf16.xpose.msra.mxu1 %v3136_v61  ;;  %1759 = vmatpush3.bf16.xpose.msra.mxu0 %v3137_v39  ;;  %v1976_v61 = vld [vmem:[%s2026_s12 + $0x3f8] sm:$0xff] }
 0x16b   : > { %1729 = vmatprep.subr.bf16.mxu1 %v1728_v40  ;;  %1761 = vmatprep.subr.bf16.mxu0 %v1760_v46  ;;  %v3144_v40 = vpack.c.bf16 %v2662_v38, %v3143_v31  ;;  %v3145_v46 = vld [vmem:[#allocation39_spill] sm:$0xff]  ;;  %v208_v38 = vld [vmem:[%s2026_s12 + $0x400] sm:$0xff] }
 0x16c   : > { %v3147_v13 = vpack.c.bf16 %v3145_v46, %v3146_v1  ;;  %v1193_v39 = vmul.f32 %v1976_v61, %v208_v38  ;;  %v212_v31 = vld [vmem:[%s2026_s12 + $0x4c0] sm:$0xff]  ;;  %v3164_v46 = vld [vmem:[#allocation23_spill] sm:$0xff] }
 0x16d   : > { %v1197_v50 = vmul.f32 %v1980_v45, %v212_v31  ;;  %v214_v38 = vld [vmem:[%s2026_s12 + $0x520] sm:$0xff] }
 0x16e   : > { %v216_v61 = vld [vmem:[%s2026_s12 + $0x580] sm:$0xff] }
 0x172   : > { %1731 = vmatpush3.bf16.xpose.msra.mxu1 %v3139_v36  ;;  %1763 = vmatpush3.bf16.xpose.msra.mxu0 %v3142_v48  ;;  %v3156_v36 = vld [vmem:[#allocation21_spill] sm:$0xff]  ;;  %v3161_v48 = vpack.c.bf16 %v3159_v37, %v3160_v2  ;;  %v217_v2 = vld [vmem:[%s2026_s12 + $0x5b0] sm:$0xff] }
 0x173   : > { %1733 = vmatprep.subr.bf16.mxu1 %v1732_v9  ;;  %1765 = vmatprep.subr.bf16.mxu0 %v1764_v22  ;;  %v207_v9 = vld [vmem:[%s2026_s12 + $0x3d0] sm:$0xff]  ;;  %v3148_v22 = vmov 1.0   ;;  %v3158_v26 = vpack.c.bf16 %v3156_v36, %v3157_v20  ;;  %v3179_v36 = vld [vmem:[#allocation10_spill] sm:$0xff]  ;;  %v1984_v20 = vld [vmem:[%s2026_s12 + $0x578] sm:$0xff]  ;;  %v1202_v10 = vmul.f32 %v1985_v17, %v217_v2 }
 0x174   : > { %v1192_v15 = vmul.f32 %v1975_v44, %v207_v9  ;;  %v213_v9 = vld [vmem:[%s2026_s12 + $0x4f0] sm:$0xff] }
 0x176   : > { %v1808_v0 = vpack.c.bf16 %v1193_v39, %v1192_v15  ;;  %v215_v15 = vld [vmem:[%s2026_s12 + $0x550] sm:$0xff]  ;;  %v3175_v39 = vld [vmem:[#allocation33_spill] sm:$0xff] }
 0x17a   : > { %1735 = vmatpush3.bf16.xpose.msra.mxu1 %v3144_v40  ;;  %1767 = vmatpush3.bf16.xpose.msra.mxu0 %v3147_v13  ;;  %v3163_v40 = vld [vmem:[#allocation24_spill] sm:$0xff]  ;;  %v3166_v13 = vld [vmem:[#allocation7_spill] sm:$0xff] }
 0x17b   : > { %1769 = vmatprep.subr.bf16.mxu1 %v1768_v23  ;;  %1801 = vmatprep.subr.bf16.mxu0 %v1800_v33  ;;  %v3153_v23 = vld [vmem:[#allocation2_spill] sm:$0xff]  ;;  %v1195_v33 = vmul.f32 %v1978_v62, %v210_v54  ;;  %v3165_v1 = vpack.c.bf16 %v3163_v40, %v3164_v46  ;;  %v3168_v58 = vpack.c.bf16 %v3166_v13, %v3167_v59  ;;  %v3178_v54 = vld [vmem:[#allocation11_spill] sm:$0xff]  ;;  %v3184_v62 = vld [vmem:[#allocation13_spill] sm:$0xff] }
 0x17c   : > { %v3154_v51 = vpack.c.bf16 %v3152_v34, %v3153_v23  ;;  %v3172_v34 = vld [vmem:[#allocation9_spill] sm:$0xff]  ;;  %v3173_v23 = vld [vmem:[#allocation8_spill] sm:$0xff]  ;;  %v3180_v53 = vpack.c.bf16 %v3178_v54, %v3179_v36  ;;  %v3187_v40 = vpack.c.bf16 %v2681_v4, %v2676_v47  ;;  %v3188_v46 = vld [vmem:[#allocation15_spill] sm:$0xff] }
 0x17d   : > { %v1812_v32 = vpack.c.bf16 %v1195_v33, %v1194_v43  ;;  %v3174_v63 = vpack.c.bf16 %v3172_v34, %v3173_v23  ;;  %v3185_v33 = vld [vmem:[#allocation12_spill] sm:$0xff] }
 0x181   : > { %1523 = vmatmul.mubr.f32.vlgmr.msra.gmra.mrb[32].mxu0 %v3148_v22  ;;  %1489 = vmatmul.mubr.f32.vlgmr.msra.gmra.mrb[0].mxu1 %v3148_v22 }
 0x182   : > { %1771 = vmatpush3.bf16.xpose.msra.mxu1 %v3151_v55  ;;  %1803 = vmatpush3.bf16.xpose.msra.mxu0 %v3154_v51  ;;  %v3171_v55 = vpack.c.bf16 %v3169_v16, %v3170_v24  ;;  %v1982_v51 = vld [vmem:[%s2026_s12 + $0x518] sm:$0xff] }
 0x183   : > { %1773 = vmatprep.subr.bf16.mxu1 %v3155_v7  ;;  %1805 = vmatprep.subr.bf16.mxu0 %v1804_v52  ;;  %v1816_v52 = vpack.c.bf16 %v1197_v50, %v1196_v60  ;;  %v1199_v7 = vmul.f32 %v1982_v51, %v214_v38 }
 0x184   : > { %1556 = vmatprep.mubr.f32.mxu1 %v3148_v22  ;;  %1590 = vmatprep.mubr.f32.mxu0 %v3148_v22 }
 0x18a   : > { %1775 = vmatpush3.bf16.xpose.msra.mxu1 %v3158_v26  ;;  %1807 = vmatpush3.bf16.xpose.msra.mxu0 %v3161_v48  ;;  %v1201_v26 = vmul.f32 %v1984_v20, %v216_v61  ;;  %v218_v48 = vld [vmem:[%s2026_s12 + $0x5e0] sm:$0xff] }
 0x18b   : > { %1777 = vmatprep.subr.bf16.mxu1 %v3162_v12  ;;  %1809 = vmatprep.subr.bf16.mxu0 %v1808_v0  ;;  %v3176_v0 = vld [vmem:[#allocation32_spill] sm:$0xff]  ;;  %v3181_v12 = vld [vmem:[#allocation35_spill] sm:$0xff] }
 0x18c   : > { %v3177_v21 = vpack.c.bf16 %v3175_v39, %v3176_v0  ;;  %v3183_v43 = vpack.c.bf16 %v3181_v12, %v3182_v30 }
 0x192   : > { %1779 = vmatpush3.bf16.xpose.msra.mxu1 %v3165_v1  ;;  %1811 = vmatpush3.bf16.xpose.msra.mxu0 %v3168_v58  ;;  %v3189_v1 = vld [vmem:[#allocation14_spill] sm:$0xff] }
 0x193   : > { %1781 = vmatprep.subr.bf16.mxu1 %v1780_v35  ;;  %1813 = vmatprep.subr.bf16.mxu0 %v1812_v32  ;;  %v1198_v35 = vmul.f32 %v1981_v28, %v213_v9  ;;  %v3186_v32 = vpack.c.bf16 %v3184_v62, %v3185_v33  ;;  %v3190_v13 = vpack.c.bf16 %v3188_v46, %v3189_v1 }
 0x195   : > { %v1820_v44 = vpack.c.bf16 %v1199_v7, %v1198_v35 }
 0x19a   : > { %1783 = vmatpush3.bf16.xpose.msra.mxu1 %v3171_v55  ;;  %1815 = vmatpush3.bf16.xpose.msra.mxu0 %v3174_v63 }
 0x19b   : > { %1785 = vmatprep.subr.bf16.mxu1 %v1784_v19  ;;  %1817 = vmatprep.subr.bf16.mxu0 %v1816_v52  ;;  %v1200_v19 = vmul.f32 %v1983_v11, %v215_v15 }
 0x19d   : > { %v1824_v37 = vpack.c.bf16 %v1201_v26, %v1200_v19 }
 0x1a2   : > { %1787 = vmatpush3.bf16.xpose.msra.mxu1 %v3177_v21  ;;  %1819 = vmatpush3.bf16.xpose.msra.mxu0 %v3180_v53 }
 0x1a3   : > { %1789 = vmatprep.subr.bf16.mxu1 %v1788_v49  ;;  %1821 = vmatprep.subr.bf16.mxu0 %v1820_v44  ;;  %v1986_v49 = vld [vmem:[%s2026_s12 + $0x5d8] sm:$0xff] }
 0x1a4   : > { %v1203_v27 = vmul.f32 %v1986_v49, %v218_v48 }
 0x1a6   : > { %v1828_v31 = vpack.c.bf16 %v1203_v27, %v1202_v10 }
 0x1aa   : > { %1791 = vmatpush3.bf16.xpose.msra.mxu1 %v3183_v43  ;;  %1823 = vmatpush3.bf16.xpose.msra.mxu0 %v3186_v32 }
 0x1ab   : > { %1793 = vmatprep.subr.bf16.mxu1 %v1792_v5  ;;  %1825 = vmatprep.subr.bf16.mxu0 %v1824_v37 }
 0x1b2   : > { %1795 = vmatpush3.bf16.xpose.msra.mxu1 %v3187_v40  ;;  %1827 = vmatpush3.bf16.xpose.msra.mxu0 %v3190_v13 }
 0x1b3   : > { %1797 = vmatprep.subr.bf16.mxu1 %v1796_v29  ;;  %1829 = vmatprep.subr.bf16.mxu0 %v1828_v31 }
 0x1ba   : > { %1799 = vmatpush3.bf16.xpose.msra.mxu1 %v1798_v8  ;;  %1831 = vmatpush3.bf16.xpose.msra.mxu0 %v3191_v25 }
 0x1c1   : > { %1557 = vmatmul.mubr.f32.vlgmr.msra.gmra.mrb[2].mxu1 %v3148_v22  ;;  %1591 = vmatmul.mubr.f32.vlgmr.msra.gmra.mrb[34].mxu0 %v3148_v22 }
 0x254   : > { %v1064_v47 = vpop.f32.mrb[32].mxu0  ;;  %v961_v4 = vpop.f32.mrb[0].mxu1 }
 0x255   : > { %v1279_v14 = vrot.slane %v1064_v47, 7  ;;  %v1066_v5 = vpop.f32.mrb[33].mxu0  ;;  %v963_v57 = vpop.f32.mrb[1].mxu1 }
 0x256   : > { %v1280_v42 = vrot.slane %v1066_v5, 7 }
 0x257   : > { %v1296_v29 = vsel %vm1295_vm8, %v961_v4, %v1279_v14 }
 0x258   : > { %v1297_v59 = vsel %vm1295_vm8, %v963_v57, %v1280_v42 }
 0x294   : > { %v1167_v6 = vpop.f32.mrb[2].mxu1  ;;  %v1270_v56 = vpop.f32.mrb[34].mxu0 }
 0x295   : > { %v1285_v3 = vrot.slane %v1167_v6, 6  ;;  %v1275_v41 = vmul.f32 0.015625, %v1270_v56  ;;  %v1169_v8 = vpop.f32.mrb[3].mxu1  ;;  %v1272_v22 = vpop.f32.mrb[35].mxu0 }
 0x296   : > { %v1286_v58 = vrot.slane %v1169_v8, 6  ;;  %v1276_v18 = vmul.f32 0.015625, %v1272_v22 }
 0x297   : > { %v1299_v60 = vsel %vm1298_vm9, %v1296_v29, %v1285_v3  ;;  %v1291_v45 = vrot.slane %v1275_v41, 5 }
 0x298   : > { %v1300_v50 = vsel %vm1298_vm9, %v1297_v59, %v1286_v58  ;;  %v1292_v52 = vrot.slane %v1276_v18, 5 }
 0x299   : > { %v1302_v9 = vsel %vm1301_vm10, %v1299_v60, %v1291_v45 }
 0x29a   : > { %v1303_v38 = vsel %vm1301_vm10, %v1300_v50, %v1292_v52 }
 0x29b   : > { %v1306_v16 = vcombine.low %v1302_v9, %v1303_v38 }
 0x29d   : > { %1308 = vst [vmem:[%s121_s17] sm:$0xff] %v1306_v16 }
 0x29e PF: > { %s11_s6 = sadd.s32 1, %s1993_s6  }
 0x29f   : > { %p8_p5 = scmp.ge.s32.totalorder %s11_s6, 4  }
 0x2a1   :  { %10 = sbr.rel (!%p8_p5) target bundleno = 1 (0x1), region = 54 }

</bundles_post_ra>
